<compile_context>
chip_gen: v6e
topology: v6e:2x2x1
jax: 0.10.0
libtpu: 0.0.40
codegen_flags: <defaults>
</compile_context>

<pallas_src>
import jax
import jax.numpy as jnp
from jax.experimental import pallas as pl
from jax.experimental.pallas import tpu as pltpu


# ---------------------------------------------------------------------------
# Sizes (scaled down, module-consistent)
# ---------------------------------------------------------------------------
CIN_PAD = 8          # input channels zero-padded 3 -> 8 (lane occupancy / DMA)
STEM_C = 32          # stand-in for ResNet stem output channels
FPN_C = 128          # stand-in for FPN lateral output channels (real: 256);
                     # 128 keeps the stem output store lane-dense (no vst.msk)
POOL = 7             # RoIAlign output resolution used by the box head
REP = 128            # TwoMLPHead representation_size (real model: 1024)
NUM_CLASSES = 2      # replaced FastRCNNPredictor head
PRED_PAD = 128       # cls(2) + box(8) packed + zero-padded to a lane-dense 128


# ---------------------------------------------------------------------------
# Pallas kernels
# ---------------------------------------------------------------------------

def _stem_fpn_kernel(x_ref, w1_ref, b1_ref, w2_ref, b2_ref, o_ref):
    """Fused: out = (relu(x @ w1 + b1)) @ w2 + b2 — intermediate never leaves VMEM."""
    h = jnp.dot(x_ref[...], w1_ref[...], preferred_element_type=jnp.float32)
    h = jnp.maximum(h + b1_ref[...], 0.0).astype(w2_ref.dtype)
    acc = jnp.dot(h, w2_ref[...], preferred_element_type=jnp.float32)
    o_ref[...] = (acc + b2_ref[...]).astype(o_ref.dtype)


def _box_head_kernel(x_ref, w6_ref, b6_ref, w7_ref, b7_ref, wp_ref, bp_ref,
                     o_ref, acc_ref):
    """Fused TwoMLPHead (fc6+ReLU, fc7+ReLU) + packed FastRCNNPredictor.

    Grid = (roi_tiles [parallel], k_tiles [arbitrary]).  The fc6 contraction
    is K-tiled into acc_ref (f32 VMEM scratch, resident across k); the fc7 +
    predictor epilogue runs only on the last k step.  wp/bp pack
    [cls_score (2) | bbox_pred (8) | zeros] into a lane-dense 128-wide output
    so the store is an unmasked full-lane vst.
    """
    k = pl.program_id(1)

    @pl.when(k == 0)
    def _():
        acc_ref[...] = jnp.zeros_like(acc_ref)

    acc_ref[...] += jnp.dot(x_ref[...], w6_ref[...],
                            preferred_element_type=jnp.float32)

    @pl.when(k == pl.num_programs(1) - 1)
    def _():
        h = jnp.maximum(acc_ref[...] + b6_ref[...], 0.0).astype(w7_ref.dtype)
        h = jnp.dot(h, w7_ref[...], preferred_element_type=jnp.float32)
        h = jnp.maximum(h + b7_ref[...], 0.0).astype(wp_ref.dtype)
        acc = jnp.dot(h, wp_ref[...], preferred_element_type=jnp.float32)
        o_ref[...] = (acc + bp_ref[...]).astype(o_ref.dtype)


# ---------------------------------------------------------------------------
# Wrappers
# ---------------------------------------------------------------------------

def pallas_fused_stem_fpn(x_nhwc, w1, b1, w2, b2, tile_m=1024):
    """x_nhwc: (B,H,W,CIN_PAD) bf16 -> (B,H,W,FPN_C) bf16, one fused kernel."""
    B, H, W, Cin = x_nhwc.shape
    C1 = w1.shape[1]
    C2 = w2.shape[1]
    M = B * H * W
    x2 = x_nhwc.reshape(M, Cin)

    # Large tiles (mem/overhead-bound kernel), but always keep >= 2 parallel
    # grid steps so both v7x TensorCores get work.
    half_m = ((pl.cdiv(M, 2) + 7) // 8) * 8
    tile_m = max(8, min(tile_m, half_m))
    n_tiles = pl.cdiv(M, tile_m)
    Mp = n_tiles * tile_m
    if Mp != M:
        # Padded rows produce bias-only garbage; sliced off before reshape.
        x2 = jnp.pad(x2, ((0, Mp - M), (0, 0)))

    # VMEM budget: every operand/output block double-buffered, 2x safety + 4 MiB.
    blk_bytes = (tile_m * Cin * 2 + tile_m * C2 * 2
                 + Cin * C1 * 2 + C1 * C2 * 2 + C1 * 4 + C2 * 4)
    vmem_limit = int(4 * blk_bytes + (4 << 20))

    flops = 2 * Mp * (Cin * C1 + C1 * C2)
    bytes_accessed = (Mp * Cin * 2 + Mp * C2 * 2
                      + Cin * C1 * 2 + C1 * C2 * 2 + (C1 + C2) * 4)

    out = pl.pallas_call(
        _stem_fpn_kernel,
        out_shape=jax.ShapeDtypeStruct((Mp, C2), jnp.bfloat16),
        grid_spec=pltpu.PrefetchScalarGridSpec(
            num_scalar_prefetch=0,
            grid=(n_tiles,),
            in_specs=[
                pl.BlockSpec((tile_m, Cin), lambda i: (i, 0)),
                pl.BlockSpec((Cin, C1), lambda i: (0, 0)),
                pl.BlockSpec((1, C1), lambda i: (0, 0)),
                pl.BlockSpec((C1, C2), lambda i: (0, 0)),
                pl.BlockSpec((1, C2), lambda i: (0, 0)),
            ],
            out_specs=pl.BlockSpec((tile_m, C2), lambda i: (i, 0)),
        ),
        compiler_params=pltpu.CompilerParams(
            dimension_semantics=("parallel",),
            vmem_limit_bytes=vmem_limit),
        cost_estimate=pl.CostEstimate(flops=flops, transcendentals=0,
                                      bytes_accessed=bytes_accessed),
    )(x2, w1, b1, w2, b2)
    return out[:M].reshape(B, H, W, C2)


def pallas_fused_box_head(roi_feats, w6, b6, w7, b7, wp, bp,
                          tile_r=128, tk=512):
    """roi_feats: (R, FPN_C*POOL*POOL) bf16 -> (R, PRED_PAD) f32 (packed logits).

    Rows (RoIs) are tiled on a parallel grid axis; the fc6 contraction is
    K-tiled (tk=512: <=1 MiB weight slice per buffer, fits v5e's 16 MiB scoped
    default, multiple of 256 for v6e/v7x MXU fill) with an f32 VMEM
    accumulator.  fc7/pred weights stay resident (constant index maps).
    """
    R, K = roi_feats.shape
    Rrep = w6.shape[1]
    NP = wp.shape[1]

    # Pad the contraction dim to a multiple of tk (zero cols in x, zero rows
    # in w6 -> no numeric effect).
    n_k = pl.cdiv(K, tk)
    Kp = n_k * tk
    if Kp != K:
        roi_feats = jnp.pad(roi_feats, ((0, 0), (0, Kp - K)))
        w6 = jnp.pad(w6, ((0, Kp - K), (0, 0)))

    # Pad RoIs to a full row tile: fills MXU pushes / bf16 sublane packing and
    # satisfies the (8,128) block rule.  Padded rows are sliced off.
    n_r = pl.cdiv(R, tile_r)
    Rp = n_r * tile_r
    if Rp != R:
        roi_feats = jnp.pad(roi_feats, ((0, Rp - R), (0, 0)))

    blk_bytes = (tile_r * tk * 2 + tk * Rrep * 2          # x tile, w6 slice
                 + Rrep * Rrep * 2 + Rrep * NP * 2        # w7, wp (resident)
                 + Rrep * 4 * 2 + NP * 4                  # biases
                 + tile_r * NP * 4)                       # out tile (f32)
    scratch_bytes = tile_r * Rrep * 4
    vmem_limit = int(4 * blk_bytes + scratch_bytes + (4 << 20))

    flops = 2 * Rp * (Kp * Rrep + Rrep * Rrep + Rrep * NP)
    bytes_accessed = ((Rp * Kp + Kp * Rrep + Rrep * Rrep + Rrep * NP) * 2
                      + Rp * NP * 4)

    out = pl.pallas_call(
        _box_head_kernel,
        out_shape=jax.ShapeDtypeStruct((Rp, NP), jnp.float32),
        grid_spec=pltpu.PrefetchScalarGridSpec(
            num_scalar_prefetch=0,
            grid=(n_r, n_k),                     # reduction axis last
            in_specs=[
                pl.BlockSpec((tile_r, tk), lambda r, k: (r, k)),
                pl.BlockSpec((tk, Rrep), lambda r, k: (k, 0)),
                pl.BlockSpec((1, Rrep), lambda r, k: (0, 0)),
                pl.BlockSpec((Rrep, Rrep), lambda r, k: (0, 0)),
                pl.BlockSpec((1, Rrep), lambda r, k: (0, 0)),
                pl.BlockSpec((Rrep, NP), lambda r, k: (0, 0)),
                pl.BlockSpec((1, NP), lambda r, k: (0, 0)),
            ],
            out_specs=pl.BlockSpec((tile_r, NP), lambda r, k: (r, 0)),
            scratch_shapes=[pltpu.VMEM((tile_r, Rrep), jnp.float32)],
        ),
        compiler_params=pltpu.CompilerParams(
            dimension_semantics=("parallel", "arbitrary"),
            vmem_limit_bytes=vmem_limit),
        cost_estimate=pl.CostEstimate(flops=flops, transcendentals=0,
                                      bytes_accessed=bytes_accessed),
    )(roi_feats, w6, b6, w7, b7, wp, bp)
    return out[:R]


# ---------------------------------------------------------------------------
# Params / forward (glue in plain JAX, compute in Pallas)
# ---------------------------------------------------------------------------

def init_params(key, in_channels=3):
    ks = jax.random.split(key, 6)
    s = 0.01
    in_feat = FPN_C * POOL * POOL

    stem_w = jax.random.normal(ks[0], (in_channels, STEM_C), jnp.float32) * s
    stem_w = jnp.pad(stem_w, ((0, CIN_PAD - in_channels), (0, 0)))  # zero rows

    cls_w = jax.random.normal(ks[4], (REP, NUM_CLASSES), jnp.float32) * s
    box_w = jax.random.normal(ks[5], (REP, NUM_CLASSES * 4), jnp.float32) * s
    pred_w = jnp.zeros((REP, PRED_PAD), jnp.float32)
    pred_w = pred_w.at[:, :NUM_CLASSES].set(cls_w)
    pred_w = pred_w.at[:, NUM_CLASSES:NUM_CLASSES + NUM_CLASSES * 4].set(box_w)

    return {
        # fused 1x1 "stem" projection + FPN lateral conv
        # TODO(synk): real ResNet-50 7x7 s2 stem conv / residual blocks.
        "stem_w": stem_w.astype(jnp.bfloat16),
        "stem_b": jnp.zeros((STEM_C,), jnp.float32),
        "fpn_w": (jax.random.normal(ks[1], (STEM_C, FPN_C), jnp.float32) * s
                  ).astype(jnp.bfloat16),
        "fpn_b": jnp.zeros((FPN_C,), jnp.float32),
        # TwoMLPHead
        "fc6_w": (jax.random.normal(ks[2], (in_feat, REP), jnp.float32) * s
                  ).astype(jnp.bfloat16),
        "fc6_b": jnp.zeros((REP,), jnp.float32),
        "fc7_w": (jax.random.normal(ks[3], (REP, REP), jnp.float32) * s
                  ).astype(jnp.bfloat16),
        "fc7_b": jnp.zeros((REP,), jnp.float32),
        # FastRCNNPredictor(in_features, num_classes=2), packed & lane-padded
        "pred_w": pred_w.astype(jnp.bfloat16),
        "pred_b": jnp.zeros((PRED_PAD,), jnp.float32),
    }


def alchemy_forward(params, images_nchw):
    """images_nchw: (B, 3, H, W) float32 — mirrors maskrcnn(images) dense path."""
    # layout: NCHW (PyTorch) -> NHWC (kernel layout), bf16, zero-pad Cin 3 -> 8
    # TODO(synk): accept NHWC/bf16 upstream to avoid these extra HBM passes.
    x = jnp.transpose(images_nchw, (0, 2, 3, 1)).astype(jnp.bfloat16)
    B, H, W, Cin = x.shape
    x = jnp.pad(x, ((0, 0), (0, 0), (0, 0), (0, CIN_PAD - Cin)))

    # backbone stem projection + ReLU + FPN lateral — ONE fused Pallas kernel
    feat = pallas_fused_stem_fpn(
        x,
        params["stem_w"], params["stem_b"].reshape(1, STEM_C),
        params["fpn_w"], params["fpn_b"].reshape(1, FPN_C),
    )

    # TODO(synk): RPN proposal generation, anchor gen, NMS and RoIAlign have
    # no clean Pallas equivalent; use fixed 7x7 corner crops as stand-in RoIs.
    # Static slices (no XLA gather / extra HBM round trip of the feature map).
    B, H, W, C = feat.shape
    P = POOL
    c00 = feat[:, :P, :P, :]
    c01 = feat[:, :P, W - P:, :]
    c10 = feat[:, H - P:, :P, :]
    c11 = feat[:, H - P:, W - P:, :]
    crops = jnp.stack([c00, c01, c10, c11], axis=1)          # (B,4,P,P,C)
    # torchvision flattens RoIAlign output in (C, P, P) order.
    crops = jnp.transpose(crops, (0, 1, 4, 2, 3))            # (B,4,C,P,P)
    roi_feats = crops.reshape(B * 4, C * POOL * POOL)        # (R, C*49)

    # roi_heads: TwoMLPHead (fc6+ReLU, fc7+ReLU) + FastRCNNPredictor, all in
    # ONE fused, RoI-tiled + K-tiled Pallas kernel with a lane-dense packed output.
    packed = pallas_fused_box_head(
        roi_feats,
        params["fc6_w"], params["fc6_b"].reshape(1, REP),
        params["fc7_w"], params["fc7_b"].reshape(1, REP),
        params["pred_w"], params["pred_b"].reshape(1, PRED_PAD),
    )
    cls_logits = packed[:, :NUM_CLASSES]
    box_deltas = packed[:, NUM_CLASSES:NUM_CLASSES + NUM_CLASSES * 4]

    return {"cls_logits": cls_logits, "box_regression": box_deltas}


if __name__ == "__main__":
    key = jax.random.PRNGKey(0)
    k_img, k_par = jax.random.split(key)

    B, Cin, Himg, Wimg = 2, 3, 16, 16
    images = jax.random.uniform(k_img, (B, Cin, Himg, Wimg), jnp.float32)
    params = init_params(k_par, in_channels=Cin)

    out = jax.jit(alchemy_forward)(params, images)
    jax.block_until_ready(out)

    assert out["cls_logits"].shape == (B * 4, NUM_CLASSES)
    assert out["box_regression"].shape == (B * 4, NUM_CLASSES * 4)
    print("KERNEL_OK")
</pallas_src>

<mosaic_0001>
module attributes {stable_mosaic.version = 11 : i64} {
  func.func @_stem_fpn_kernel(%arg0: i32, %arg1: memref<256x8xbf16, #tpu.memory_space<vmem>>, %arg2: memref<8x32xbf16, #tpu.memory_space<vmem>>, %arg3: memref<1x32xf32, #tpu.memory_space<vmem>>, %arg4: memref<32x128xbf16, #tpu.memory_space<vmem>>, %arg5: memref<1x128xf32, #tpu.memory_space<vmem>>, %arg6: memref<256x128xbf16, #tpu.memory_space<vmem>>) attributes {dimension_semantics = [#tpu.dimension_semantics<parallel>], iteration_bounds = array<i64: 2>, scalar_prefetch = 0 : i64, scratch_operands = 0 : i64, tpu.core_type = #tpu.core_type<tc>, window_params = [{transform_indices = @transform_0, window_bounds = array<i64: 256, 8>}, {pipeline_mode = #tpu.pipeline_mode<synchronous>, transform_indices = @transform_1, window_bounds = array<i64: 8, 32>}, {pipeline_mode = #tpu.pipeline_mode<synchronous>, transform_indices = @transform_2, window_bounds = array<i64: 1, 32>}, {pipeline_mode = #tpu.pipeline_mode<synchronous>, transform_indices = @transform_3, window_bounds = array<i64: 32, 128>}, {pipeline_mode = #tpu.pipeline_mode<synchronous>, transform_indices = @transform_4, window_bounds = array<i64: 1, 128>}, {transform_indices = @transform_5, window_bounds = array<i64: 256, 128>}]} {
    %c0 = arith.constant 0 : index
    %c0_0 = arith.constant 0 : index
    %0 = vector.load %arg1[%c0, %c0_0] : memref<256x8xbf16, #tpu.memory_space<vmem>>, vector<256x8xbf16>
    %c0_1 = arith.constant 0 : index
    %c0_2 = arith.constant 0 : index
    %1 = vector.load %arg2[%c0_1, %c0_2] : memref<8x32xbf16, #tpu.memory_space<vmem>>, vector<8x32xbf16>
    %cst = arith.constant dense<0.000000e+00> : vector<256x32xf32>
    %2 = tpu.matmul %0, %1, %cst {dimension_numbers = #tpu.dot_dimension_numbers<[1], [0], [0], [1], [0, 0, 1, 1], [], []>} : vector<256x8xbf16>, vector<8x32xbf16>, vector<256x32xf32> -> vector<256x32xf32>
    %c0_3 = arith.constant 0 : index
    %c0_4 = arith.constant 0 : index
    %3 = vector.load %arg3[%c0_3, %c0_4] : memref<1x32xf32, #tpu.memory_space<vmem>>, vector<1x32xf32>
    %4 = vector.broadcast %3 : vector<1x32xf32> to vector<256x32xf32>
    %5 = arith.addf %2, %4 : vector<256x32xf32>
    %cst_5 = arith.constant 0.000000e+00 : f32
    %6 = vector.broadcast %cst_5 : f32 to vector<256x32xf32>
    %7 = arith.maximumf %5, %6 : vector<256x32xf32>
    %8 = arith.truncf %7 : vector<256x32xf32> to vector<256x32xbf16>
    %c0_6 = arith.constant 0 : index
    %c0_7 = arith.constant 0 : index
    %9 = vector.load %arg4[%c0_6, %c0_7] : memref<32x128xbf16, #tpu.memory_space<vmem>>, vector<32x128xbf16>
    %cst_8 = arith.constant dense<0.000000e+00> : vector<256x128xf32>
    %10 = tpu.matmul %8, %9, %cst_8 {dimension_numbers = #tpu.dot_dimension_numbers<[1], [0], [0], [1], [0, 0, 1, 1], [], []>} : vector<256x32xbf16>, vector<32x128xbf16>, vector<256x128xf32> -> vector<256x128xf32>
    %c0_9 = arith.constant 0 : index
    %c0_10 = arith.constant 0 : index
    %11 = vector.load %arg5[%c0_9, %c0_10] : memref<1x128xf32, #tpu.memory_space<vmem>>, vector<1x128xf32>
    %12 = vector.broadcast %11 : vector<1x128xf32> to vector<256x128xf32>
    %13 = arith.addf %10, %12 : vector<256x128xf32>
    %14 = arith.truncf %13 : vector<256x128xf32> to vector<256x128xbf16>
    %c0_11 = arith.constant 0 : index
    %c0_12 = arith.constant 0 : index
    %15 = vector.load %arg6[%c0_11, %c0_12] : memref<256x128xbf16, #tpu.memory_space<vmem>>, vector<256x128xbf16>
    tpu.vector_store %arg6[%c0_11, %c0_12], %14 {strides = array<i32>} : memref<256x128xbf16, #tpu.memory_space<vmem>>, vector<256x128xbf16>,
    return
  }
  func.func @transform_0(%arg0: i32) -> (i32, i32) {
    %c0_i32 = arith.constant 0 : i32
    %c0_i32_0 = arith.constant 0 : i32
    return %arg0, %c0_i32 : i32, i32
  }
  func.func @transform_1(%arg0: i32) -> (i32, i32) {
    %c0_i32 = arith.constant 0 : i32
    %c0_i32_0 = arith.constant 0 : i32
    %c0_i32_1 = arith.constant 0 : i32
    return %c0_i32, %c0_i32_0 : i32, i32
  }
  func.func @transform_2(%arg0: i32) -> (i32, i32) {
    %c0_i32 = arith.constant 0 : i32
    %c0_i32_0 = arith.constant 0 : i32
    %c0_i32_1 = arith.constant 0 : i32
    return %c0_i32, %c0_i32_0 : i32, i32
  }
  func.func @transform_3(%arg0: i32) -> (i32, i32) {
    %c0_i32 = arith.constant 0 : i32
    %c0_i32_0 = arith.constant 0 : i32
    %c0_i32_1 = arith.constant 0 : i32
    return %c0_i32, %c0_i32_0 : i32, i32
  }
  func.func @transform_4(%arg0: i32) -> (i32, i32) {
    %c0_i32 = arith.constant 0 : i32
    %c0_i32_0 = arith.constant 0 : i32
    %c0_i32_1 = arith.constant 0 : i32
    return %c0_i32, %c0_i32_0 : i32, i32
  }
  func.func @transform_5(%arg0: i32) -> (i32, i32) {
    %c0_i32 = arith.constant 0 : i32
    %c0_i32_0 = arith.constant 0 : i32
    return %arg0, %c0_i32 : i32, i32
  }
}

module attributes {stable_mosaic.version = 11 : i64} {
  func.func @_box_head_kernel(%arg0: i32, %arg1: i32, %arg2: memref<128x512xbf16, #tpu.memory_space<vmem>>, %arg3: memref<512x128xbf16, #tpu.memory_space<vmem>>, %arg4: memref<1x128xf32, #tpu.memory_space<vmem>>, %arg5: memref<128x128xbf16, #tpu.memory_space<vmem>>, %arg6: memref<1x128xf32, #tpu.memory_space<vmem>>, %arg7: memref<128x128xbf16, #tpu.memory_space<vmem>>, %arg8: memref<1x128xf32, #tpu.memory_space<vmem>>, %arg9: memref<128x128xf32, #tpu.memory_space<vmem>>, %arg10: memref<128x128xf32, #tpu.memory_space<vmem>>) attributes {dimension_semantics = [#tpu.dimension_semantics<parallel>, #tpu.dimension_semantics<arbitrary>], iteration_bounds = array<i64: 1, 13>, scalar_prefetch = 0 : i64, scratch_operands = 1 : i64, tpu.core_type = #tpu.core_type<tc>, window_params = [{transform_indices = @transform_0, window_bounds = array<i64: 128, 512>}, {transform_indices = @transform_1, window_bounds = array<i64: 512, 128>}, {pipeline_mode = #tpu.pipeline_mode<synchronous>, transform_indices = @transform_2, window_bounds = array<i64: 1, 128>}, {pipeline_mode = #tpu.pipeline_mode<synchronous>, transform_indices = @transform_3, window_bounds = array<i64: 128, 128>}, {pipeline_mode = #tpu.pipeline_mode<synchronous>, transform_indices = @transform_4, window_bounds = array<i64: 1, 128>}, {pipeline_mode = #tpu.pipeline_mode<synchronous>, transform_indices = @transform_5, window_bounds = array<i64: 128, 128>}, {pipeline_mode = #tpu.pipeline_mode<synchronous>, transform_indices = @transform_6, window_bounds = array<i64: 1, 128>}, {transform_indices = @transform_7, window_bounds = array<i64: 128, 128>}]} {
    %c0_i32 = arith.constant 0 : i32
    %0 = arith.cmpi eq, %arg1, %c0_i32 : i32
    %1 = arith.extui %0 : i1 to i32
    %c0_i32_0 = arith.constant 0 : i32
    %2 = arith.cmpi ne, %1, %c0_i32_0 : i32
    scf.if %2 {
      %cst_9 = arith.constant 0.000000e+00 : f32
      %12 = vector.broadcast %cst_9 : f32 to vector<128x128xf32>
      %c0_10 = arith.constant 0 : index
      %c0_11 = arith.constant 0 : index
      %13 = vector.load %arg10[%c0_10, %c0_11] : memref<128x128xf32, #tpu.memory_space<vmem>>, vector<128x128xf32>
      tpu.vector_store %arg10[%c0_10, %c0_11], %12 {strides = array<i32>} : memref<128x128xf32, #tpu.memory_space<vmem>>, vector<128x128xf32>,
    } else {
    }
    %c0 = arith.constant 0 : index
    %c0_1 = arith.constant 0 : index
    %3 = vector.load %arg10[%c0, %c0_1] : memref<128x128xf32, #tpu.memory_space<vmem>>, vector<128x128xf32>
    %c0_2 = arith.constant 0 : index
    %c0_3 = arith.constant 0 : index
    %4 = vector.load %arg2[%c0_2, %c0_3] : memref<128x512xbf16, #tpu.memory_space<vmem>>, vector<128x512xbf16>
    %c0_4 = arith.constant 0 : index
    %c0_5 = arith.constant 0 : index
    %5 = vector.load %arg3[%c0_4, %c0_5] : memref<512x128xbf16, #tpu.memory_space<vmem>>, vector<512x128xbf16>
    %cst = arith.constant dense<0.000000e+00> : vector<128x128xf32>
    %6 = tpu.matmul %4, %5, %cst {dimension_numbers = #tpu.dot_dimension_numbers<[1], [0], [0], [1], [0, 0, 1, 1], [], []>} : vector<128x512xbf16>, vector<512x128xbf16>, vector<128x128xf32> -> vector<128x128xf32>
    %7 = arith.addf %3, %6 : vector<128x128xf32>
    %c0_6 = arith.constant 0 : index
    %c0_7 = arith.constant 0 : index
    %8 = vector.load %arg10[%c0_6, %c0_7] : memref<128x128xf32, #tpu.memory_space<vmem>>, vector<128x128xf32>
    tpu.vector_store %arg10[%c0_6, %c0_7], %7 {strides = array<i32>} : memref<128x128xf32, #tpu.memory_space<vmem>>, vector<128x128xf32>,
    %c12_i32 = arith.constant 12 : i32
    %9 = arith.cmpi eq, %arg1, %c12_i32 : i32
    %10 = arith.extui %9 : i1 to i32
    %c0_i32_8 = arith.constant 0 : i32
    %11 = arith.cmpi ne, %10, %c0_i32_8 : i32
    scf.if %11 {
      %c0_9 = arith.constant 0 : index
      %c0_10 = arith.constant 0 : index
      %12 = vector.load %arg10[%c0_9, %c0_10] : memref<128x128xf32, #tpu.memory_space<vmem>>, vector<128x128xf32>
      %c0_11 = arith.constant 0 : index
      %c0_12 = arith.constant 0 : index
      %13 = vector.load %arg4[%c0_11, %c0_12] : memref<1x128xf32, #tpu.memory_space<vmem>>, vector<1x128xf32>
      %14 = vector.broadcast %13 : vector<1x128xf32> to vector<128x128xf32>
      %15 = arith.addf %12, %14 : vector<128x128xf32>
      %cst_13 = arith.constant 0.000000e+00 : f32
      %16 = vector.broadcast %cst_13 : f32 to vector<128x128xf32>
      %17 = arith.maximumf %15, %16 : vector<128x128xf32>
      %18 = arith.truncf %17 : vector<128x128xf32> to vector<128x128xbf16>
      %c0_14 = arith.constant 0 : index
      %c0_15 = arith.constant 0 : index
      %19 = vector.load %arg5[%c0_14, %c0_15] : memref<128x128xbf16, #tpu.memory_space<vmem>>, vector<128x128xbf16>
      %cst_16 = arith.constant dense<0.000000e+00> : vector<128x128xf32>
      %20 = tpu.matmul %18, %19, %cst_16 {dimension_numbers = #tpu.dot_dimension_numbers<[1], [0], [0], [1], [0, 0, 1, 1], [], []>} : vector<128x128xbf16>, vector<128x128xbf16>, vector<128x128xf32> -> vector<128x128xf32>
      %c0_17 = arith.constant 0 : index
      %c0_18 = arith.constant 0 : index
      %21 = vector.load %arg6[%c0_17, %c0_18] : memref<1x128xf32, #tpu.memory_space<vmem>>, vector<1x128xf32>
      %22 = vector.broadcast %21 : vector<1x128xf32> to vector<128x128xf32>
      %23 = arith.addf %20, %22 : vector<128x128xf32>
      %cst_19 = arith.constant 0.000000e+00 : f32
      %24 = vector.broadcast %cst_19 : f32 to vector<128x128xf32>
      %25 = arith.maximumf %23, %24 : vector<128x128xf32>
      %26 = arith.truncf %25 : vector<128x128xf32> to vector<128x128xbf16>
      %c0_20 = arith.constant 0 : index
      %c0_21 = arith.constant 0 : index
      %27 = vector.load %arg7[%c0_20, %c0_21] : memref<128x128xbf16, #tpu.memory_space<vmem>>, vector<128x128xbf16>
      %cst_22 = arith.constant dense<0.000000e+00> : vector<128x128xf32>
      %28 = tpu.matmul %26, %27, %cst_22 {dimension_numbers = #tpu.dot_dimension_numbers<[1], [0], [0], [1], [0, 0, 1, 1], [], []>} : vector<128x128xbf16>, vector<128x128xbf16>, vector<128x128xf32> -> vector<128x128xf32>
      %c0_23 = arith.constant 0 : index
      %c0_24 = arith.constant 0 : index
      %29 = vector.load %arg8[%c0_23, %c0_24] : memref<1x128xf32, #tpu.memory_space<vmem>>, vector<1x128xf32>
      %30 = vector.broadcast %29 : vector<1x128xf32> to vector<128x128xf32>
      %31 = arith.addf %28, %30 : vector<128x128xf32>
      %c0_25 = arith.constant 0 : index
      %c0_26 = arith.constant 0 : index
      %32 = vector.load %arg9[%c0_25, %c0_26] : memref<128x128xf32, #tpu.memory_space<vmem>>, vector<128x128xf32>
      tpu.vector_store %arg9[%c0_25, %c0_26], %31 {strides = array<i32>} : memref<128x128xf32, #tpu.memory_space<vmem>>, vector<128x128xf32>,
    } else {
    }
    return
  }
  func.func @transform_0(%arg0: i32, %arg1: i32) -> (i32, i32) {
    %c0_i32 = arith.constant 0 : i32
    return %arg0, %arg1 : i32, i32
  }
  func.func @transform_1(%arg0: i32, %arg1: i32) -> (i32, i32) {
    %c0_i32 = arith.constant 0 : i32
    %c0_i32_0 = arith.constant 0 : i32
    return %arg1, %c0_i32 : i32, i32
  }
  func.func @transform_2(%arg0: i32, %arg1: i32) -> (i32, i32) {
    %c0_i32 = arith.constant 0 : i32
    %c0_i32_0 = arith.constant 0 : i32
    %c0_i32_1 = arith.constant 0 : i32
    return %c0_i32, %c0_i32_0 : i32, i32
  }
  func.func @transform_3(%arg0: i32, %arg1: i32) -> (i32, i32) {
    %c0_i32 = arith.constant 0 : i32
    %c0_i32_0 = arith.constant 0 : i32
    %c0_i32_1 = arith.constant 0 : i32
    return %c0_i32, %c0_i32_0 : i32, i32
  }
  func.func @transform_4(%arg0: i32, %arg1: i32) -> (i32, i32) {
    %c0_i32 = arith.constant 0 : i32
    %c0_i32_0 = arith.constant 0 : i32
    %c0_i32_1 = arith.constant 0 : i32
    return %c0_i32, %c0_i32_0 : i32, i32
  }
  func.func @transform_5(%arg0: i32, %arg1: i32) -> (i32, i32) {
    %c0_i32 = arith.constant 0 : i32
    %c0_i32_0 = arith.constant 0 : i32
    %c0_i32_1 = arith.constant 0 : i32
    return %c0_i32, %c0_i32_0 : i32, i32
  }
  func.func @transform_6(%arg0: i32, %arg1: i32) -> (i32, i32) {
    %c0_i32 = arith.constant 0 : i32
    %c0_i32_0 = arith.constant 0 : i32
    %c0_i32_1 = arith.constant 0 : i32
    return %c0_i32, %c0_i32_0 : i32, i32
  }
  func.func @transform_7(%arg0: i32, %arg1: i32) -> (i32, i32) {
    %c0_i32 = arith.constant 0 : i32
    %c0_i32_0 = arith.constant 0 : i32
    return %arg0, %c0_i32 : i32, i32
  }
}

</mosaic_0001>

<bundles_post_ra>
// kernel: alchemy_forward.2
= control target key start
LH: loop header
LB: loop body
LE: loop exit
PB: predicated region body
PF: predicated region fallthrough
CT: control target
= control target key end

     0   :  { %10 = vsyncpa [#allocation3], 0  ;;  %s1957_s0 = inlined_call_operand.vmem [shape: bf16[512,8], index: 0, kind: input, shape index: {}]   ;;  %s1958_s1 = inlined_call_operand.hbm [shape: bf16[8,32], index: 1, kind: input, shape index: {}]   ;;  %s1959_s2 = inlined_call_operand.hbm [shape: f32[1,32], index: 2, kind: input, shape index: {}]   ;;  %s1960_s3 = inlined_call_operand.hbm [shape: bf16[32,128], index: 3, kind: input, shape index: {}]   ;;  %s1961_s4 = inlined_call_operand.hbm [shape: f32[1,128], index: 4, kind: input, shape index: {}]   ;;  %s1962_s5 = inlined_call_operand.vmem [shape: bf16[512,128], index: 5, kind: output, shape index: {}]  }
   0x1   :  { %11 = vsyncpa [#allocation5], 0 }
   0x2   :  { %12 = vsyncpa [#allocation8], 0  ;;  %s1719_s18 = smov 0  }
   0x3 LB: > { %s1683_s19 = smov [#allocation4]   ;;  %s1154_s21 = sadd.s32 4294967295, %s1681_s18   ;;  %s1681_s18 = sphi %s1719_s18, %s18_s18  }
   0x4   : > { %s183_s20 = sshll.u32 %s1683_s19, 4  ;;  %p1156_p0 = scmp.ge.s32.totalorder %s1681_s18, 1  ;;  %s184_s20 = int_to_ptr.vmem [resolvable:$true] %s183_s20 }
   0x5   : > { %p159_p1 = scmp.lt.s32.totalorder %s1681_s18, 3  ;;  %p1729_p2 = scmp.eq.s32.totalorder %s1154_s21, 0 }
   0x6   : > { %s1684_s24 = smov [#allocation2]   ;;  %s1685_s26 = smov [#allocation6]  }
   0x7   : > { %s1966_s22 = scalar_select %p1729_p2, 1, 0 }
   0x8   : > { %p1733_p3 = pnand %p1156_p0, %p159_p1  ;;  %s172_s25 = sshll.u32 %s1684_s24, 4  ;;  %s173_s25 = int_to_ptr.vmem [resolvable:$true] %s172_s25 }
   0x9   : > { %s193_s27 = sshll.u32 %s1685_s26, 4  ;;  %s1686_s29 = smov [#allocation7]   ;;  %s1745_s27 = int_to_ptr.vmem [resolvable:$true] %s193_s27 }
   0xa   : > { %s1967_s23 = scalar_select %p1733_p3, 1, 0 }
   0xb   : > { %p1506_p4 = pneg %p1733_p3  ;;  %s1747_s30 = sshll.u32 %s1686_s29, 4  ;;  %s208_s30 = int_to_ptr.vmem [resolvable:$true] %s1747_s30 }
   0xc   : > { %s1570_s6 = scalar_lea.vmem %s184_s20, 16  ;;  %s1577_s7 = scalar_lea.vmem %s184_s20, 32 }
   0xd   : > { %p1741_p5 = pnand %p1729_p2, %p1506_p4  ;;  %p1571_p7 = scmp.ne.s32.totalorder %s184_s20, %s1570_s6 }
   0xe   : > { %p1578_p10 = scmp.lt.s32.totalorder %s184_s20, %s184_s20  ;;  %p1579_p11 = scmp.lt.s32.totalorder %s1577_s7, %s1570_s6 }
   0xf   : > { %p1561_p6 = pneg %p1741_p5 }
  0x10   : > { %p1580_p12 = por %p1579_p11, %p1578_p10 }
  0x11   : > { %p1573_p8 = pnand %p1571_p7, %p1561_p6 }
  0x13   : > { %p1574_p9 = pneg %p1573_p8 }
  0x15   : > { %p1581_p13 = pnand %p1580_p12, %p1574_p9 }
  0x17   : > { %1584 = shalt.err (!%p1581_p13)
}
  0x18   : > { %1512 = dma.hbm_to_vmem [thread:$0]  (!%p1741_p5), %s1959_s2, 16, %s184_s20, [#allocation5]  }
  0x19   : > { %s1596_s10 = scalar_lea.vmem %s173_s25, 64  ;;  %p1604_p7 = scmp.lt.s32.totalorder %s173_s25, %s173_s25 }
  0x1a   : > { %p1597_p0 = scmp.ne.s32.totalorder %s173_s25, %s1596_s10  ;;  %p1605_p8 = scmp.lt.s32.totalorder %s1596_s10, %s1596_s10 }
  0x1c   : > { %p1599_p1 = pnand %p1597_p0, %p1561_p6  ;;  %p1606_p2 = por %p1605_p8, %p1604_p7 }
  0x1e   : > { %p1600_p4 = pneg %p1599_p1 }
  0x20   : > { %p1607_p3 = pnand %p1606_p2, %p1600_p4 }
  0x22   : > { %1610 = shalt.err (!%p1607_p3)
}
  0x23   : > { %1509 = dma.hbm_to_vmem [thread:$0]  (!%p1741_p5), %s1958_s1, 64, %s173_s25, [#allocation3]  }
  0x24   : > { %s1622_s13 = scalar_lea.vmem %s1745_s27, 256  ;;  %p1630_p12 = scmp.lt.s32.totalorder %s1745_s27, %s1745_s27 }
  0x25   : > { %p1623_p9 = scmp.ne.s32.totalorder %s1745_s27, %s1622_s13  ;;  %p1631_p2 = scmp.lt.s32.totalorder %s1622_s13, %s1622_s13 }
  0x27   : > { %p1625_p10 = pnand %p1623_p9, %p1561_p6  ;;  %p1632_p3 = por %p1631_p2, %p1630_p12 }
  0x29   : > { %p1626_p11 = pneg %p1625_p10 }
  0x2b   : > { %p1633_p13 = pnand %p1632_p3, %p1626_p11 }
  0x2d   : > { %1636 = shalt.err (!%p1633_p13)
}
  0x2e   : > { %s1687_s14 = smov 64   ;;  %s1688_s15 = smov 4  }
  0x2f   : > { %1515 = dma.hbm_to_vmem [thread:$0]  (!%p1741_p5), %s1960_s3, 256, %s1745_s27, [#allocation5], %s1687_s14, %s1687_s14, %s1688_s15  }
  0x30   : > { %s1648_s19 = scalar_lea.vmem %s208_s30, 16  ;;  %s1655_s20 = scalar_lea.vmem %s208_s30, 32 }
  0x31   : > { %p1649_p0 = scmp.ne.s32.totalorder %s208_s30, %s1648_s19  ;;  %p1656_p7 = scmp.lt.s32.totalorder %s208_s30, %s208_s30 }
  0x32   : > { %p1657_p8 = scmp.lt.s32.totalorder %s1655_s20, %s1648_s19 }
  0x33   : > { %p1651_p1 = pnand %p1649_p0, %p1561_p6 }
  0x34   : > { %p1658_p9 = por %p1657_p8, %p1656_p7 }
  0x35   : > { %p1652_p4 = pneg %p1651_p1 }
  0x37   : > { %p1659_p10 = pnand %p1658_p9, %p1652_p4 }
  0x39   : > { %1662 = shalt.err (!%p1659_p10)
}
  0x3a   : > { %1518 = dma.hbm_to_vmem [thread:$0]  (!%p1741_p5), %s1961_s4, 16, %s208_s30, [#allocation8]  }
  0x3b   : > { %p1969_p11 = scmp.ne.s32.totalorder %s1967_s23, 0 }
  0x3c   : > { %p1970_p12 = scmp.ne.s32.totalorder (!%p1969_p11), %s1966_s22, 0 }
  0x3d   : > { %229 = sbr.rel (%p1969_p11) target bundleno = 545 (0x221), region = 40 }
  0x42   : > { %1668 = dma.done.wait (%p1970_p12), [#allocation3], 64  }
  0x43   : > { %1670 = vsyncadd (%p1970_p12), [#allocation3], 4294967232 }
  0x44   : > { %1672 = dma.done.wait (%p1970_p12), [#allocation5], 272  }
  0x45   : > { %1674 = vsyncadd (%p1970_p12), [#allocation5], 4294967024 }
  0x46   : > { %1676 = dma.done.wait (%p1970_p12), [#allocation8], 16  }
  0x47   : > { %1678 = vsyncadd (%p1970_p12), [#allocation8], 4294967280  ;;  %s1167_s23 = sshll.u32 %s1154_s21, 5  ;;  %vm451_vm0 = vcmask 1043456   ;;  %vm402_vm1 = vcmask 64512   ;;  %v1557_v18 = vld [vmem:[#allocation6 + $0x8] sm:$0xff]  }
  0x48   : > { %p270_p5 = scmp.lt.s32.totalorder %s1167_s23, 63  ;;  %v314_v0 = vld [vmem:[#allocation2] sm:$0xf]  ;;  %1453 = vmatprep.subr.bf16.mxu1 %v1557_v18  ;;  %v1558_v19 = vld [vmem:[#allocation6] sm:$0xff]   ;;  %v1847_v22 = vld [vmem:[#allocation4] ss:$0 sm:$0xff] }
  0x49   : > { %1489 = vmatprep.subr.msk.bf16.mxu0 %vm451_vm0, %v314_v0  ;;  %v453_v1 = vsel %vm451_vm0, %v314_v0, 0  ;;  %1454 = vmatpush3.bf16.msra.mxu1 %v1557_v18  ;;  %vm687_vm2 = vcmask 261120  }
  0x4a   : > { %s1972_s23 = smov (!%p270_p5, %s1167_s23), 63  ;;  %1420 = vmatpush3.bf16.msra.mxu0 %v453_v1  ;;  %1455 = vmatprep.subr.bf16.mxu1 %v1558_v19 }
  0x4b   : > { %s1168_s26 = sshll.u32 %s1972_s23, 2 }
  0x4c   : > { %s1813_s29 = scalar_lea.vmem %s1957_s0, %s1168_s26  ;;  %s1906_s30 = scalar_lea.vmem %s1962_s5, %s1168_s26 }
  0x4d   : > { %v1541_v2 = vld [vmem:[%s1813_s29] sm:$0xff]   ;;  %v1542_v3 = vld [vmem:[%s1813_s29 + $0x8] sm:$0xff]   ;;  %v1543_v4 = vld [vmem:[%s1813_s29 + $0x10] sm:$0xff]   ;;  %1456 = vmatpush3.bf16.msra.mxu1 %v1558_v19 }
  0x4e   : > { %1421 = vmatprep.mubr.msk.bf16.mxu0 %vm402_vm1, %v1541_v2  ;;  %v1544_v5 = vld [vmem:[%s1813_s29 + $0x18] sm:$0xff]   ;;  %v1545_v6 = vld [vmem:[%s1813_s29 + $0x20] sm:$0xff]   ;;  %v1546_v7 = vld [vmem:[%s1813_s29 + $0x28] sm:$0xff]  }
  0x4f   : > { %1422 = vmatmul.mubr.msk.bf16.vlgmr.msra.gmra.mxu0 %vm402_vm1, %v1542_v3  ;;  %v1547_v8 = vld [vmem:[%s1813_s29 + $0x30] sm:$0xff]   ;;  %v1548_v9 = vld [vmem:[%s1813_s29 + $0x38] sm:$0xff]   ;;  %v1549_v10 = vld [vmem:[%s1813_s29 + $0x40] sm:$0xff]  }
  0x50   : > { %1425 = vmatprep.mubr.msk.bf16.mxu0 %vm402_vm1, %v1543_v4  ;;  %v1550_v11 = vld [vmem:[%s1813_s29 + $0x48] sm:$0xff]   ;;  %v1551_v12 = vld [vmem:[%s1813_s29 + $0x50] sm:$0xff]   ;;  %v1552_v13 = vld [vmem:[%s1813_s29 + $0x58] sm:$0xff]  }
  0x51   : > { %v1553_v14 = vld [vmem:[%s1813_s29 + $0x60] sm:$0xff]   ;;  %v1554_v15 = vld [vmem:[%s1813_s29 + $0x68] sm:$0xff]   ;;  %v1555_v16 = vld [vmem:[%s1813_s29 + $0x70] sm:$0xff]  }
  0x52   : > { %v1556_v17 = vld [vmem:[%s1813_s29 + $0x78] sm:$0xff]  }
  0x57   : > { %1426 = vmatmul.mubr.msk.bf16.gmra.mxu0 %vm402_vm1, %v1544_v5 }
  0x58   : > { %1429 = vmatprep.mubr.msk.bf16.mxu0 %vm402_vm1, %v1545_v6 }
  0x5f   : > { %1430 = vmatmul.mubr.msk.bf16.gmra.mxu0 %vm402_vm1, %v1546_v7 }
  0x60   : > { %1433 = vmatprep.mubr.msk.bf16.mxu0 %vm402_vm1, %v1547_v8 }
  0x67   : > { %1434 = vmatmul.mubr.msk.bf16.gmra.mxu0 %vm402_vm1, %v1548_v9 }
  0x68   : > { %1437 = vmatprep.mubr.msk.bf16.mxu0 %vm402_vm1, %v1549_v10 }
  0x6f   : > { %1438 = vmatmul.mubr.msk.bf16.gmra.mxu0 %vm402_vm1, %v1550_v11 }
  0x70   : > { %1441 = vmatprep.mubr.msk.bf16.mxu0 %vm402_vm1, %v1551_v12 }
  0x77   : > { %1442 = vmatmul.mubr.msk.bf16.gmra.mxu0 %vm402_vm1, %v1552_v13 }
  0x78   : > { %1445 = vmatprep.mubr.msk.bf16.mxu0 %vm402_vm1, %v1553_v14 }
  0x7f   : > { %1446 = vmatmul.mubr.msk.bf16.gmra.mxu0 %vm402_vm1, %v1554_v15 }
  0x80   : > { %1449 = vmatprep.mubr.msk.bf16.mxu0 %vm402_vm1, %v1555_v16 }
  0x87   : > { %1450 = vmatmul.mubr.msk.bf16.gmra.mxu0 %vm402_vm1, %v1556_v17 }
 0x10f   : > { %v1423_v20 = vpop.f32.mrf.mxu0 }
 0x110   : > { %v498_v26 = vadd.f32 %v1423_v20, %v1847_v22 }
 0x111   : > { %v489_v21 = vpop.f32.mrf.mxu0 }
 0x112   : > { %v490_v24 = vadd.f32 %v1847_v22, %v489_v21  ;;  %v618_v33 = vmax.f32 %v498_v26, 0.0 }
 0x113   : > { %v1424_v23 = vpop.f32.mrf.mxu0 }
 0x114   : > { %v501_v25 = vadd.f32 %v1424_v23, %v1847_v22  ;;  %v616_v31 = vmax.f32 %v490_v24, 0.0 }
 0x115   : > { %v492_v27 = vpop.f32.mrf.mxu0 }
 0x116   : > { %v493_v28 = vadd.f32 %v1847_v22, %v492_v27  ;;  %v619_v29 = vmax.f32 %v501_v25, 0.0 }
 0x117   : > { %v1427_v30 = vpop.f32.mrf.mxu0 }
 0x118   : > { %v617_v32 = vmax.f32 %v493_v28, 0.0  ;;  %v649_v36 = vpack.c.bf16 %v619_v29, %v618_v33  ;;  %v514_v40 = vadd.f32 %v1427_v30, %v1847_v22 }
 0x119   : > { %v505_v34 = vpop.f32.mrf.mxu0 }
 0x11a   : > { %v648_v35 = vpack.c.bf16 %v617_v32, %v616_v31  ;;  %v506_v38 = vadd.f32 %v1847_v22, %v505_v34  ;;  %v622_v47 = vmax.f32 %v514_v40, 0.0 }
 0x11b   : > { %v1428_v37 = vpop.f32.mrf.mxu0 }
 0x11c   : > { %v517_v39 = vadd.f32 %v1428_v37, %v1847_v22  ;;  %1457 = vmatprep.mubr.msk.bf16.mxu1 %vm687_vm2, %v648_v35  ;;  %v620_v45 = vmax.f32 %v506_v38, 0.0 }
 0x11d   : > { %v508_v41 = vpop.f32.mrf.mxu0  ;;  %1458 = vmatmul.mubr.msk.bf16.vlgmr.msra.gmra.mxu1 %vm687_vm2, %v649_v36 }
 0x11e   : > { %v509_v42 = vadd.f32 %v1847_v22, %v508_v41  ;;  %v623_v43 = vmax.f32 %v517_v39, 0.0 }
 0x11f   : > { %v1431_v44 = vpop.f32.mrf.mxu0 }
 0x120   : > { %v621_v46 = vmax.f32 %v509_v42, 0.0  ;;  %v651_v50 = vpack.c.bf16 %v623_v43, %v622_v47  ;;  %v530_v54 = vadd.f32 %v1431_v44, %v1847_v22 }
 0x121   : > { %v521_v48 = vpop.f32.mrf.mxu0 }
 0x122   : > { %v650_v49 = vpack.c.bf16 %v621_v46, %v620_v45  ;;  %v522_v52 = vadd.f32 %v1847_v22, %v521_v48  ;;  %v626_v61 = vmax.f32 %v530_v54, 0.0 }
 0x123   : > { %v1432_v51 = vpop.f32.mrf.mxu0 }
 0x124   : > { %v533_v53 = vadd.f32 %v1432_v51, %v1847_v22  ;;  %1461 = vmatprep.mubr.msk.bf16.mxu1 %vm687_vm2, %v650_v49  ;;  %v624_v59 = vmax.f32 %v522_v52, 0.0 }
 0x125   : > { %v524_v55 = vpop.f32.mrf.mxu0  ;;  %1462 = vmatmul.mubr.msk.bf16.gmra.mxu1 %vm687_vm2, %v651_v50 }
 0x126   : > { %v525_v56 = vadd.f32 %v1847_v22, %v524_v55  ;;  %v627_v57 = vmax.f32 %v533_v53, 0.0 }
 0x127   : > { %v1435_v58 = vpop.f32.mrf.mxu0 }
 0x128   : > { %v625_v60 = vmax.f32 %v525_v56, 0.0  ;;  %v653_v0 = vpack.c.bf16 %v627_v57, %v626_v61  ;;  %v546_v4 = vadd.f32 %v1435_v58, %v1847_v22 }
 0x129   : > { %v537_v62 = vpop.f32.mrf.mxu0 }
 0x12a   : > { %v652_v63 = vpack.c.bf16 %v625_v60, %v624_v59  ;;  %v538_v2 = vadd.f32 %v1847_v22, %v537_v62  ;;  %v630_v11 = vmax.f32 %v546_v4, 0.0 }
 0x12b   : > { %v1436_v1 = vpop.f32.mrf.mxu0 }
 0x12c   : > { %v549_v3 = vadd.f32 %v1436_v1, %v1847_v22  ;;  %1465 = vmatprep.mubr.msk.bf16.mxu1 %vm687_vm2, %v652_v63  ;;  %v628_v9 = vmax.f32 %v538_v2, 0.0 }
 0x12d   : > { %v540_v5 = vpop.f32.mrf.mxu0  ;;  %1466 = vmatmul.mubr.msk.bf16.gmra.mxu1 %vm687_vm2, %v653_v0 }
 0x12e   : > { %v541_v6 = vadd.f32 %v1847_v22, %v540_v5  ;;  %v631_v7 = vmax.f32 %v549_v3, 0.0 }
 0x12f   : > { %v1439_v8 = vpop.f32.mrf.mxu0 }
 0x130   : > { %v629_v10 = vmax.f32 %v541_v6, 0.0  ;;  %v655_v14 = vpack.c.bf16 %v631_v7, %v630_v11  ;;  %v562_v18 = vadd.f32 %v1439_v8, %v1847_v22  ;;  %v1897_v7 = vld [vmem:[#allocation7] ss:$0 sm:$0xff] }
 0x131   : > { %v553_v12 = vpop.f32.mrf.mxu0 }
 0x132   : > { %v654_v13 = vpack.c.bf16 %v629_v10, %v628_v9  ;;  %v554_v16 = vadd.f32 %v1847_v22, %v553_v12  ;;  %v634_v26 = vmax.f32 %v562_v18, 0.0 }
 0x133   : > { %v1440_v15 = vpop.f32.mrf.mxu0 }
 0x134   : > { %v565_v17 = vadd.f32 %v1440_v15, %v1847_v22  ;;  %1469 = vmatprep.mubr.msk.bf16.mxu1 %vm687_vm2, %v654_v13  ;;  %v632_v24 = vmax.f32 %v554_v16, 0.0 }
 0x135   : > { %v556_v19 = vpop.f32.mrf.mxu0  ;;  %1470 = vmatmul.mubr.msk.bf16.gmra.mxu1 %vm687_vm2, %v655_v14 }
 0x136   : > { %v557_v20 = vadd.f32 %v1847_v22, %v556_v19  ;;  %v635_v21 = vmax.f32 %v565_v17, 0.0 }
 0x137   : > { %v1443_v23 = vpop.f32.mrf.mxu0 }
 0x138   : > { %v633_v25 = vmax.f32 %v557_v20, 0.0  ;;  %v657_v29 = vpack.c.bf16 %v635_v21, %v634_v26  ;;  %v578_v33 = vadd.f32 %v1443_v23, %v1847_v22 }
 0x139   : > { %v569_v27 = vpop.f32.mrf.mxu0 }
 0x13a   : > { %v656_v28 = vpack.c.bf16 %v633_v25, %v632_v24  ;;  %v570_v31 = vadd.f32 %v1847_v22, %v569_v27  ;;  %v638_v40 = vmax.f32 %v578_v33, 0.0 }
 0x13b   : > { %v1444_v30 = vpop.f32.mrf.mxu0 }
 0x13c   : > { %v581_v32 = vadd.f32 %v1444_v30, %v1847_v22  ;;  %1473 = vmatprep.mubr.msk.bf16.mxu1 %vm687_vm2, %v656_v28  ;;  %v636_v38 = vmax.f32 %v570_v31, 0.0 }
 0x13d   : > { %v572_v34 = vpop.f32.mrf.mxu0  ;;  %1474 = vmatmul.mubr.msk.bf16.gmra.mxu1 %vm687_vm2, %v657_v29 }
 0x13e   : > { %v573_v35 = vadd.f32 %v1847_v22, %v572_v34  ;;  %v639_v36 = vmax.f32 %v581_v32, 0.0 }
 0x13f   : > { %v1447_v37 = vpop.f32.mrf.mxu0 }
 0x140   : > { %v637_v39 = vmax.f32 %v573_v35, 0.0  ;;  %v659_v43 = vpack.c.bf16 %v639_v36, %v638_v40  ;;  %v594_v47 = vadd.f32 %v1447_v37, %v1847_v22 }
 0x141   : > { %v585_v41 = vpop.f32.mrf.mxu0 }
 0x142   : > { %v658_v42 = vpack.c.bf16 %v637_v39, %v636_v38  ;;  %v586_v45 = vadd.f32 %v1847_v22, %v585_v41  ;;  %v642_v54 = vmax.f32 %v594_v47, 0.0 }
 0x143   : > { %v1448_v44 = vpop.f32.mrf.mxu0 }
 0x144   : > { %v597_v46 = vadd.f32 %v1448_v44, %v1847_v22  ;;  %1477 = vmatprep.mubr.msk.bf16.mxu1 %vm687_vm2, %v658_v42  ;;  %v640_v52 = vmax.f32 %v586_v45, 0.0 }
 0x145   : > { %v588_v48 = vpop.f32.mrf.mxu0  ;;  %1478 = vmatmul.mubr.msk.bf16.gmra.mxu1 %vm687_vm2, %v659_v43 }
 0x146   : > { %v589_v49 = vadd.f32 %v1847_v22, %v588_v48  ;;  %v643_v50 = vmax.f32 %v597_v46, 0.0 }
 0x147   : > { %v1451_v51 = vpop.f32.mrf.mxu0 }
 0x148   : > { %v641_v53 = vmax.f32 %v589_v49, 0.0  ;;  %v661_v57 = vpack.c.bf16 %v643_v50, %v642_v54  ;;  %v610_v61 = vadd.f32 %v1451_v51, %v1847_v22 }
 0x149   : > { %v601_v55 = vpop.f32.mrf.mxu0 }
 0x14a   : > { %v660_v56 = vpack.c.bf16 %v641_v53, %v640_v52  ;;  %v602_v59 = vadd.f32 %v1847_v22, %v601_v55  ;;  %v646_v3 = vmax.f32 %v610_v61, 0.0 }
 0x14b   : > { %v1452_v58 = vpop.f32.mrf.mxu0 }
 0x14c   : > { %v613_v60 = vadd.f32 %v1452_v58, %v1847_v22  ;;  %1481 = vmatprep.mubr.msk.bf16.mxu1 %vm687_vm2, %v660_v56  ;;  %v644_v1 = vmax.f32 %v602_v59, 0.0 }
 0x14d   : > { %v604_v62 = vpop.f32.mrf.mxu0  ;;  %1482 = vmatmul.mubr.msk.bf16.gmra.mxu1 %vm687_vm2, %v661_v57 }
 0x14e   : > { %v605_v63 = vadd.f32 %v1847_v22, %v604_v62  ;;  %v647_v0 = vmax.f32 %v613_v60, 0.0 }
 0x150   : > { %v645_v2 = vmax.f32 %v605_v63, 0.0  ;;  %v663_v5 = vpack.c.bf16 %v647_v0, %v646_v3 }
 0x152   : > { %v662_v4 = vpack.c.bf16 %v645_v2, %v644_v1 }
 0x154   : > { %1485 = vmatprep.mubr.msk.bf16.mxu1 %vm687_vm2, %v662_v4 }
 0x155   : > { %1486 = vmatmul.mubr.msk.bf16.gmra.mxu1 %vm687_vm2, %v663_v5 }
 0x1dd   : > { %v1459_v6 = vpop.f32.mrf.mxu1 }
 0x1de   : > { %v779_v10 = vadd.f32 %v1459_v6, %v1897_v7 }
 0x1df   : > { %v770_v8 = vpop.f32.mrf.mxu1 }
 0x1e0   : > { %v771_v12 = vadd.f32 %v1897_v7, %v770_v8 }
 0x1e1   : > { %v1460_v9 = vpop.f32.mrf.mxu1 }
 0x1e2   : > { %v782_v11 = vadd.f32 %v1460_v9, %v1897_v7 }
 0x1e3   : > { %v773_v22 = vpop.f32.mrf.mxu1 }
 0x1e4   : > { %v1297_v13 = vpack.c.bf16 %v782_v11, %v779_v10  ;;  %v774_v14 = vadd.f32 %v1897_v7, %v773_v22 }
 0x1e5   : > { %v1463_v15 = vpop.f32.mrf.mxu1 }
 0x1e6   : > { %1369 = vst [vmem:[%s1906_s30 + $0x8] sm:$0xff] %v1297_v13   ;;  %v1292_v16 = vpack.c.bf16 %v774_v14, %v771_v12  ;;  %v795_v19 = vadd.f32 %v1463_v15, %v1897_v7 }
 0x1e7   : > { %v786_v17 = vpop.f32.mrf.mxu1 }
 0x1e8   : > { %1293 = vst [vmem:[%s1906_s30] sm:$0xff] %v1292_v16   ;;  %v787_v23 = vadd.f32 %v1897_v7, %v786_v17 }
 0x1e9   : > { %v1464_v18 = vpop.f32.mrf.mxu1 }
 0x1ea   : > { %v798_v20 = vadd.f32 %v1464_v18, %v1897_v7 }
 0x1eb   : > { %v789_v21 = vpop.f32.mrf.mxu1 }
 0x1ec   : > { %v1307_v24 = vpack.c.bf16 %v798_v20, %v795_v19  ;;  %v790_v25 = vadd.f32 %v1897_v7, %v789_v21 }
 0x1ed   : > { %v1467_v26 = vpop.f32.mrf.mxu1 }
 0x1ee   : > { %1371 = vst [vmem:[%s1906_s30 + $0x18] sm:$0xff] %v1307_v24   ;;  %v1302_v27 = vpack.c.bf16 %v790_v25, %v787_v23  ;;  %v811_v30 = vadd.f32 %v1467_v26, %v1897_v7 }
 0x1ef   : > { %v802_v28 = vpop.f32.mrf.mxu1 }
 0x1f0   : > { %1370 = vst [vmem:[%s1906_s30 + $0x10] sm:$0xff] %v1302_v27   ;;  %v803_v33 = vadd.f32 %v1897_v7, %v802_v28 }
 0x1f1   : > { %v1468_v29 = vpop.f32.mrf.mxu1 }
 0x1f2   : > { %v814_v31 = vadd.f32 %v1468_v29, %v1897_v7 }
 0x1f3   : > { %v805_v32 = vpop.f32.mrf.mxu1 }
 0x1f4   : > { %v1317_v34 = vpack.c.bf16 %v814_v31, %v811_v30  ;;  %v806_v35 = vadd.f32 %v1897_v7, %v805_v32 }
 0x1f5   : > { %v1471_v36 = vpop.f32.mrf.mxu1 }
 0x1f6   : > { %1373 = vst [vmem:[%s1906_s30 + $0x28] sm:$0xff] %v1317_v34   ;;  %v1312_v37 = vpack.c.bf16 %v806_v35, %v803_v33  ;;  %v827_v40 = vadd.f32 %v1471_v36, %v1897_v7 }
 0x1f7   : > { %v818_v38 = vpop.f32.mrf.mxu1 }
 0x1f8   : > { %1372 = vst [vmem:[%s1906_s30 + $0x20] sm:$0xff] %v1312_v37   ;;  %v819_v43 = vadd.f32 %v1897_v7, %v818_v38 }
 0x1f9   : > { %v1472_v39 = vpop.f32.mrf.mxu1 }
 0x1fa   : > { %v830_v41 = vadd.f32 %v1472_v39, %v1897_v7 }
 0x1fb   : > { %v821_v42 = vpop.f32.mrf.mxu1 }
 0x1fc   : > { %v1327_v44 = vpack.c.bf16 %v830_v41, %v827_v40  ;;  %v822_v45 = vadd.f32 %v1897_v7, %v821_v42 }
 0x1fd   : > { %v1475_v46 = vpop.f32.mrf.mxu1 }
 0x1fe   : > { %1375 = vst [vmem:[%s1906_s30 + $0x38] sm:$0xff] %v1327_v44   ;;  %v1322_v47 = vpack.c.bf16 %v822_v45, %v819_v43  ;;  %v843_v50 = vadd.f32 %v1475_v46, %v1897_v7 }
 0x1ff   : > { %v834_v48 = vpop.f32.mrf.mxu1 }
 0x200   : > { %1374 = vst [vmem:[%s1906_s30 + $0x30] sm:$0xff] %v1322_v47   ;;  %v835_v53 = vadd.f32 %v1897_v7, %v834_v48 }
 0x201   : > { %v1476_v49 = vpop.f32.mrf.mxu1 }
 0x202   : > { %v846_v51 = vadd.f32 %v1476_v49, %v1897_v7 }
 0x203   : > { %v837_v52 = vpop.f32.mrf.mxu1 }
 0x204   : > { %v1337_v54 = vpack.c.bf16 %v846_v51, %v843_v50  ;;  %v838_v55 = vadd.f32 %v1897_v7, %v837_v52 }
 0x205   : > { %v1479_v56 = vpop.f32.mrf.mxu1 }
 0x206   : > { %1377 = vst [vmem:[%s1906_s30 + $0x48] sm:$0xff] %v1337_v54   ;;  %v1332_v57 = vpack.c.bf16 %v838_v55, %v835_v53  ;;  %v859_v60 = vadd.f32 %v1479_v56, %v1897_v7 }
 0x207   : > { %v850_v58 = vpop.f32.mrf.mxu1 }
 0x208   : > { %1376 = vst [vmem:[%s1906_s30 + $0x40] sm:$0xff] %v1332_v57   ;;  %v851_v63 = vadd.f32 %v1897_v7, %v850_v58 }
 0x209   : > { %v1480_v59 = vpop.f32.mrf.mxu1 }
 0x20a   : > { %v862_v61 = vadd.f32 %v1480_v59, %v1897_v7 }
 0x20b   : > { %v853_v62 = vpop.f32.mrf.mxu1 }
 0x20c   : > { %v1347_v0 = vpack.c.bf16 %v862_v61, %v859_v60  ;;  %v854_v1 = vadd.f32 %v1897_v7, %v853_v62 }
 0x20d   : > { %v1483_v2 = vpop.f32.mrf.mxu1 }
 0x20e   : > { %1379 = vst [vmem:[%s1906_s30 + $0x58] sm:$0xff] %v1347_v0   ;;  %v1342_v3 = vpack.c.bf16 %v854_v1, %v851_v63  ;;  %v875_v6 = vadd.f32 %v1483_v2, %v1897_v7 }
 0x20f   : > { %v866_v4 = vpop.f32.mrf.mxu1 }
 0x210   : > { %1378 = vst [vmem:[%s1906_s30 + $0x50] sm:$0xff] %v1342_v3   ;;  %v867_v10 = vadd.f32 %v1897_v7, %v866_v4 }
 0x211   : > { %v1484_v5 = vpop.f32.mrf.mxu1 }
 0x212   : > { %v878_v8 = vadd.f32 %v1484_v5, %v1897_v7 }
 0x213   : > { %v869_v9 = vpop.f32.mrf.mxu1 }
 0x214   : > { %v1357_v11 = vpack.c.bf16 %v878_v8, %v875_v6  ;;  %v870_v22 = vadd.f32 %v1897_v7, %v869_v9 }
 0x215   : > { %v1487_v12 = vpop.f32.mrf.mxu1 }
 0x216   : > { %1381 = vst [vmem:[%s1906_s30 + $0x68] sm:$0xff] %v1357_v11   ;;  %v1352_v13 = vpack.c.bf16 %v870_v22, %v867_v10  ;;  %v891_v16 = vadd.f32 %v1487_v12, %v1897_v7 }
 0x217   : > { %v882_v14 = vpop.f32.mrf.mxu1 }
 0x218   : > { %1380 = vst [vmem:[%s1906_s30 + $0x60] sm:$0xff] %v1352_v13   ;;  %v883_v19 = vadd.f32 %v1897_v7, %v882_v14 }
 0x219   : > { %v1488_v15 = vpop.f32.mrf.mxu1 }
 0x21a   : > { %v894_v17 = vadd.f32 %v1488_v15, %v1897_v7 }
 0x21b   : > { %v885_v18 = vpop.f32.mrf.mxu1 }
 0x21c   : > { %v1367_v20 = vpack.c.bf16 %v894_v17, %v891_v16  ;;  %v886_v21 = vadd.f32 %v1897_v7, %v885_v18 }
 0x21e   : > { %1383 = vst [vmem:[%s1906_s30 + $0x78] sm:$0xff] %v1367_v20   ;;  %v1362_v23 = vpack.c.bf16 %v886_v21, %v883_v19 }
 0x220   : > { %1382 = vst [vmem:[%s1906_s30 + $0x70] sm:$0xff] %v1362_v23  }
 0x221 PF: > { %s18_s18 = sadd.s32 1, %s1681_s18  }
 0x222   : > { %p15_p6 = scmp.ge.s32.totalorder %s18_s18, 4  }
 0x224   :  { %17 = sbr.rel (!%p15_p6) target bundleno = 3 (0x3), region = 87 }
 0x229   :  { %1079 = vsyncpa [#allocation3], 1 }
 0x22a   :  { %1081 = vsyncpa [#allocation3 + $0x1], 1 }
 0x22b   :  { %1082 = vsyncpa [#allocation5], 1 }
 0x22c   :  { %1083 = vsyncpa [#allocation8], 1 }

// kernel: alchemy_forward.3
= control target key start
LH: loop header
LB: loop body
LE: loop exit
PB: predicated region body
PF: predicated region fallthrough
CT: control target
= control target key end

     0   :  { %s2182_s24 = smov 0   ;;  %s2184_s25 = smov 0   ;;  %s2508_s0 = inlined_call_operand.vmem [shape: bf16[128,6656], index: 0, kind: input, shape index: {}]   ;;  %s2509_s1 = inlined_call_operand.vmem [shape: bf16[6656,128], index: 1, kind: input, shape index: {}]   ;;  %s2510_s2 = inlined_call_operand.vmem [shape: f32[1,128], index: 2, kind: input, shape index: {}]   ;;  %s2511_s3 = inlined_call_operand.vmem [shape: bf16[128,128], index: 3, kind: input, shape index: {}]   ;;  %s2512_s4 = inlined_call_operand.vmem [shape: f32[1,128], index: 4, kind: input, shape index: {}]   ;;  %s2513_s5 = inlined_call_operand.vmem [shape: bf16[128,128], index: 5, kind: input, shape index: {}]   ;;  %s2514_s6 = inlined_call_operand.vmem [shape: f32[1,128], index: 6, kind: input, shape index: {}]   ;;  %s2515_s7 = inlined_call_operand.vmem [shape: f32[128,128], index: 7, kind: output, shape index: {}]  }
   0x1   :  { %s2186_s26 = smov 0   ;;  %s2188_s27 = smov 0  }
   0x2   :  { %s2190_s28 = smov 0  }
   0x3 LB: > { %s26_s29 = sadd.s32 1, %s2135_s27  ;;  %p45_p1 = scmp.ne.s32.totalorder %s2127_s25, %s2123_s24  ;;  %s2139_s28 = sphi %s2190_s28, %s17_s28   ;;  %s2135_s27 = sphi %s2188_s27, %s2519_s27   ;;  %s2131_s26 = sphi %s2186_s26, %s2518_s26   ;;  %s2127_s25 = sphi %s2184_s25, %s2517_s25   ;;  %s2123_s24 = sphi %s2182_s24, %s2516_s24  }
   0x4   : > { %p27_p0 = scmp.ge.s32.totalorder %s26_s29, 13  ;;  %p46_p2 = scmp.eq.s32.totalorder %s2139_s28, 0 }
   0x5   : > { %s38_s8 = sadd.s32 1, %s2127_s25  ;;  %p1642_p5 = scmp.ge.s32.totalorder %s2139_s28, 13 }
   0x6   : > { %s2521_s29 = smov (%p27_p0, %s26_s29), 0  ;;  %p47_p3 = por %p46_p2, %p45_p1 }
   0x7   : > { %s34_s30 = ssub.s32 %s2135_s27, %s2521_s29  ;;  %243 = sbr.rel (%p1642_p5) target bundleno = 32 (0x20), region = 36 }
   0x8   : > { %p36_p4 = scmp.eq.s32.totalorder %s34_s30, 0 }
   0xa   : > { %s2217_s9 = scalar_select %p36_p4, %s2127_s25, %s38_s8  }
   0xc   : > { %246 = sbr.rel (!%p47_p3) target bundleno = 32 (0x20), region = 40  ;;  %s248_s10 = sand.u32 (%p47_p3), 1, %s2127_s25  }
   0xd   : > { %s1739_s11 = sshll.u32 (%p47_p3), %s2135_s27, 4  ;;  %s1643_s12 = sshll.u32 (%p47_p3), %s248_s10, 8 }
   0xe   : > { %s2225_s15 = scalar_lea.vmem (%p47_p3), %s2508_s0, %s1739_s11  ;;  %s2230_s16 = scalar_lea.vmem (%p47_p3), [#allocation3], %s1643_s12 }
   0xf   : > { %v269_v0 = vld [vmem:[%s2225_s15] sm:$0xff] (%p47_p3)  ;;  %v271_v1 = vld [vmem:[%s2225_s15 + $0x8] sm:$0xff] (%p47_p3)  ;;  %v273_v2 = vld [vmem:[%s2225_s15 + $0xd0] sm:$0xff] (%p47_p3) }
  0x10   : > { %270 = vst [vmem:[%s2230_s16] sm:$0xff] (%p47_p3), %v269_v0  ;;  %272 = vst [vmem:[%s2230_s16 + $0x8] sm:$0xff] (%p47_p3), %v271_v1  ;;  %v275_v3 = vld [vmem:[%s2225_s15 + $0xd8] sm:$0xff] (%p47_p3)  ;;  %v277_v4 = vld [vmem:[%s2225_s15 + $0x1a0] sm:$0xff] (%p47_p3) }
  0x11   : > { %274 = vst [vmem:[%s2230_s16 + $0x10] sm:$0xff] %v273_v2  ;;  %v279_v5 = vld [vmem:[%s2225_s15 + $0x1a8] sm:$0xff]  ;;  %276 = vst [vmem:[%s2230_s16 + $0x18] sm:$0xff] %v275_v3  ;;  %v281_v6 = vld [vmem:[%s2225_s15 + $0x270] sm:$0xff] }
  0x12   : > { %278 = vst [vmem:[%s2230_s16 + $0x20] sm:$0xff] %v277_v4  ;;  %280 = vst [vmem:[%s2230_s16 + $0x28] sm:$0xff] %v279_v5  ;;  %v283_v7 = vld [vmem:[%s2225_s15 + $0x278] sm:$0xff]  ;;  %v285_v8 = vld [vmem:[%s2225_s15 + $0x340] sm:$0xff] }
  0x13   : > { %282 = vst [vmem:[%s2230_s16 + $0x30] sm:$0xff] %v281_v6  ;;  %284 = vst [vmem:[%s2230_s16 + $0x38] sm:$0xff] %v283_v7  ;;  %v287_v9 = vld [vmem:[%s2225_s15 + $0x348] sm:$0xff]  ;;  %v289_v10 = vld [vmem:[%s2225_s15 + $0x410] sm:$0xff] }
  0x14   : > { %286 = vst [vmem:[%s2230_s16 + $0x40] sm:$0xff] %v285_v8  ;;  %v291_v11 = vld [vmem:[%s2225_s15 + $0x418] sm:$0xff]  ;;  %288 = vst [vmem:[%s2230_s16 + $0x48] sm:$0xff] %v287_v9  ;;  %v293_v12 = vld [vmem:[%s2225_s15 + $0x4e0] sm:$0xff] }
  0x15   : > { %290 = vst [vmem:[%s2230_s16 + $0x50] sm:$0xff] %v289_v10  ;;  %292 = vst [vmem:[%s2230_s16 + $0x58] sm:$0xff] %v291_v11  ;;  %v295_v13 = vld [vmem:[%s2225_s15 + $0x4e8] sm:$0xff]  ;;  %v297_v14 = vld [vmem:[%s2225_s15 + $0x5b0] sm:$0xff] }
  0x16   : > { %294 = vst [vmem:[%s2230_s16 + $0x60] sm:$0xff] %v293_v12  ;;  %296 = vst [vmem:[%s2230_s16 + $0x68] sm:$0xff] %v295_v13  ;;  %v299_v15 = vld [vmem:[%s2225_s15 + $0x5b8] sm:$0xff]  ;;  %v301_v16 = vld [vmem:[%s2225_s15 + $0x680] sm:$0xff] }
  0x17   : > { %298 = vst [vmem:[%s2230_s16 + $0x70] sm:$0xff] %v297_v14  ;;  %v303_v17 = vld [vmem:[%s2225_s15 + $0x688] sm:$0xff]  ;;  %300 = vst [vmem:[%s2230_s16 + $0x78] sm:$0xff] %v299_v15  ;;  %v305_v18 = vld [vmem:[%s2225_s15 + $0x750] sm:$0xff] }
  0x18   : > { %302 = vst [vmem:[%s2230_s16 + $0x80] sm:$0xff] %v301_v16  ;;  %304 = vst [vmem:[%s2230_s16 + $0x88] sm:$0xff] %v303_v17  ;;  %v307_v19 = vld [vmem:[%s2225_s15 + $0x758] sm:$0xff]  ;;  %v309_v20 = vld [vmem:[%s2225_s15 + $0x820] sm:$0xff] }
  0x19   : > { %306 = vst [vmem:[%s2230_s16 + $0x90] sm:$0xff] %v305_v18  ;;  %308 = vst [vmem:[%s2230_s16 + $0x98] sm:$0xff] %v307_v19  ;;  %v311_v21 = vld [vmem:[%s2225_s15 + $0x828] sm:$0xff]  ;;  %v313_v22 = vld [vmem:[%s2225_s15 + $0x8f0] sm:$0xff] }
  0x1a   : > { %310 = vst [vmem:[%s2230_s16 + $0xa0] sm:$0xff] %v309_v20  ;;  %v315_v23 = vld [vmem:[%s2225_s15 + $0x8f8] sm:$0xff]  ;;  %312 = vst [vmem:[%s2230_s16 + $0xa8] sm:$0xff] %v311_v21  ;;  %v317_v24 = vld [vmem:[%s2225_s15 + $0x9c0] sm:$0xff] }
  0x1b   : > { %314 = vst [vmem:[%s2230_s16 + $0xb0] sm:$0xff] %v313_v22  ;;  %316 = vst [vmem:[%s2230_s16 + $0xb8] sm:$0xff] %v315_v23  ;;  %v319_v25 = vld [vmem:[%s2225_s15 + $0x9c8] sm:$0xff]  ;;  %v321_v26 = vld [vmem:[%s2225_s15 + $0xa90] sm:$0xff] }
  0x1c   : > { %318 = vst [vmem:[%s2230_s16 + $0xc0] sm:$0xff] %v317_v24  ;;  %320 = vst [vmem:[%s2230_s16 + $0xc8] sm:$0xff] %v319_v25  ;;  %v323_v27 = vld [vmem:[%s2225_s15 + $0xa98] sm:$0xff]  ;;  %v325_v28 = vld [vmem:[%s2225_s15 + $0xb60] sm:$0xff] }
  0x1d   : > { %322 = vst [vmem:[%s2230_s16 + $0xd0] sm:$0xff] %v321_v26  ;;  %v327_v29 = vld [vmem:[%s2225_s15 + $0xb68] sm:$0xff]  ;;  %324 = vst [vmem:[%s2230_s16 + $0xd8] sm:$0xff] %v323_v27  ;;  %v329_v30 = vld [vmem:[%s2225_s15 + $0xc30] sm:$0xff] }
  0x1e   : > { %326 = vst [vmem:[%s2230_s16 + $0xe0] sm:$0xff] %v325_v28  ;;  %328 = vst [vmem:[%s2230_s16 + $0xe8] sm:$0xff] %v327_v29  ;;  %v331_v31 = vld [vmem:[%s2225_s15 + $0xc38] sm:$0xff] }
  0x1f   : > { %330 = vst [vmem:[%s2230_s16 + $0xf0] sm:$0xff] %v329_v30  ;;  %332 = vst [vmem:[%s2230_s16 + $0xf8] sm:$0xff] %v331_v31 }
  0x20 PF: > { %p1646_p6 = scmp.ge.s32.totalorder %s2139_s28, 1  ;;  %p346_p7 = scmp.lt.s32.totalorder %s2139_s28, 14 }
  0x22   : > { %p347_p8 = pnand %p1646_p6, %p346_p7 }
  0x23   : > { %s353_s17 = sand.u32 (!%p347_p8), 1, %s2123_s24   ;;  %s1648_s18 = sshll.u32 (!%p347_p8), %s2131_s26, 6 }
  0x24   : > { %350 = sbr.rel (%p347_p8) target bundleno = 817 (0x331), region = 67  ;;  %s1647_s19 = sshll.u32 (!%p347_p8), %s353_s17, 8 }
  0x25   : > { %p392_p9 = scmp.lt.s32.totalorder (!%p347_p8), %s1648_s18, 831  ;;  %s2302_s30 = scalar_lea.vmem (!%p347_p8), [#allocation3], %s1647_s19 }
  0x26   : > { %p1650_p10 = scmp.ne.s32.totalorder (!%p347_p8), %s2131_s26, 0 }
  0x29   : > { %s2523_s18 = smov (!%p392_p9, %s1648_s18), 831  ;;  %407 = sbr.rel (%p1650_p10) target bundleno = 55 (0x37), region = 75 }
  0x2a   : > { %s1649_s20 = sshll.u32 %s2523_s18, 2 }
  0x2b   : > { %s2300_s23 = scalar_lea.vmem %s2509_s1, %s1649_s20 }
  0x2e   : > { %v2141_v32 = vmov 0.0  }
  0x2f   : > { %408 = vst [vmem:[#allocation2 + $0x30] sm:$0xff] %v2141_v32  ;;  %409 = vst [vmem:[#allocation2] sm:$0xff] %v2141_v32 }
  0x30   : > { %410 = vst [vmem:[#allocation2 + $0x58] sm:$0xff] %v2141_v32  ;;  %411 = vst [vmem:[#allocation2 + $0x18] sm:$0xff] %v2141_v32 }
  0x31   : > { %412 = vst [vmem:[#allocation2 + $0x50] sm:$0xff] %v2141_v32  ;;  %413 = vst [vmem:[#allocation2 + $0x68] sm:$0xff] %v2141_v32 }
  0x32   : > { %414 = vst [vmem:[#allocation2 + $0x8] sm:$0xff] %v2141_v32  ;;  %415 = vst [vmem:[#allocation2 + $0x48] sm:$0xff] %v2141_v32 }
  0x33   : > { %416 = vst [vmem:[#allocation2 + $0x40] sm:$0xff] %v2141_v32  ;;  %417 = vst [vmem:[#allocation2 + $0x20] sm:$0xff] %v2141_v32 }
  0x34   : > { %418 = vst [vmem:[#allocation2 + $0x10] sm:$0xff] %v2141_v32  ;;  %419 = vst [vmem:[#allocation2 + $0x38] sm:$0xff] %v2141_v32 }
  0x35   : > { %420 = vst [vmem:[#allocation2 + $0x60] sm:$0xff] %v2141_v32  ;;  %421 = vst [vmem:[#allocation2 + $0x70] sm:$0xff] %v2141_v32 }
  0x36   : > { %422 = vst [vmem:[#allocation2 + $0x78] sm:$0xff] %v2141_v32  ;;  %423 = vst [vmem:[#allocation2 + $0x28] sm:$0xff] %v2141_v32 }
  0x37 PF: > { %v2005_v33 = vld [vmem:[%s2300_s23 + $0x78] sm:$0xff]   ;;  %v2009_v37 = vld [vmem:[%s2300_s23 + $0x70] sm:$0xff]   ;;  %v2013_v41 = vld [vmem:[%s2300_s23 + $0x68] sm:$0xff]   ;;  %p1715_p11 = scmp.ne.s32.totalorder %s2131_s26, 12 }
  0x38   : > { %v2006_v34 = vld [vmem:[%s2300_s23 + $0xf8] sm:$0xff]   ;;  %1740 = vmatprep.subr.bf16.mxu0 %v2005_v33  ;;  %v2010_v38 = vld [vmem:[%s2300_s23 + $0xf0] sm:$0xff]   ;;  %v2014_v42 = vld [vmem:[%s2300_s23 + $0xe8] sm:$0xff]  }
  0x39   : > { %v2007_v35 = vld [vmem:[%s2300_s23 + $0x38] sm:$0xff]   ;;  %1804 = vmatprep.subr.bf16.mxu1 %v2006_v34  ;;  %v2011_v39 = vld [vmem:[%s2300_s23 + $0x30] sm:$0xff]   ;;  %v2015_v43 = vld [vmem:[%s2300_s23 + $0x28] sm:$0xff]  }
  0x3a   : > { %v2008_v36 = vld [vmem:[%s2300_s23 + $0xb8] sm:$0xff]   ;;  %1741 = vmatpush3.bf16.msra.mxu0 %v2007_v35  ;;  %v2012_v40 = vld [vmem:[%s2300_s23 + $0xb0] sm:$0xff]   ;;  %v2016_v44 = vld [vmem:[%s2300_s23 + $0xa8] sm:$0xff]  }
  0x3b   : > { %1805 = vmatpush3.bf16.msra.mxu1 %v2008_v36  ;;  %1742 = vmatprep.subr.bf16.mxu0 %v2009_v37  ;;  %v2017_v45 = vld [vmem:[%s2300_s23 + $0x60] sm:$0xff]   ;;  %v2021_v49 = vld [vmem:[%s2300_s23 + $0x58] sm:$0xff]   ;;  %v2025_v53 = vld [vmem:[%s2300_s23 + $0x50] sm:$0xff]  }
  0x3c   : > { %1806 = vmatprep.subr.bf16.mxu1 %v2010_v38  ;;  %v2018_v46 = vld [vmem:[%s2300_s23 + $0xe0] sm:$0xff]   ;;  %v2022_v50 = vld [vmem:[%s2300_s23 + $0xd8] sm:$0xff]   ;;  %v2026_v54 = vld [vmem:[%s2300_s23 + $0xd0] sm:$0xff]  }
  0x3d   : > { %v2019_v47 = vld [vmem:[%s2300_s23 + $0x20] sm:$0xff]   ;;  %v2023_v51 = vld [vmem:[%s2300_s23 + $0x18] sm:$0xff]   ;;  %v2027_v55 = vld [vmem:[%s2300_s23 + $0x10] sm:$0xff]  }
  0x3e   : > { %1743 = vmatpush3.bf16.msra.mxu0 %v2011_v39  ;;  %v2020_v48 = vld [vmem:[%s2300_s23 + $0xa0] sm:$0xff]   ;;  %v2024_v52 = vld [vmem:[%s2300_s23 + $0x98] sm:$0xff]   ;;  %v2028_v56 = vld [vmem:[%s2300_s23 + $0x90] sm:$0xff]  }
  0x3f   : > { %1807 = vmatpush3.bf16.msra.mxu1 %v2012_v40  ;;  %1744 = vmatprep.subr.bf16.mxu0 %v2013_v41  ;;  %v2029_v57 = vld [vmem:[%s2300_s23 + $0x48] sm:$0xff]   ;;  %v2033_v61 = vld [vmem:[%s2300_s23 + $0x40] sm:$0xff]   ;;  %v424_v40 = vld [vmem:[#allocation2 + $0x30] sm:$0xff] }
  0x40   : > { %1808 = vmatprep.subr.bf16.mxu1 %v2014_v42  ;;  %v2030_v58 = vld [vmem:[%s2300_s23 + $0xc8] sm:$0xff]   ;;  %v2034_v62 = vld [vmem:[%s2300_s23 + $0xc0] sm:$0xff]  }
  0x41   : > { %v2031_v59 = vld [vmem:[%s2300_s23 + $0x8] sm:$0xff]   ;;  %v2035_v63 = vld [vmem:[%s2300_s23] sm:$0xff]  }
  0x42   : > { %1745 = vmatpush3.bf16.msra.mxu0 %v2015_v43  ;;  %v2032_v60 = vld [vmem:[%s2300_s23 + $0x88] sm:$0xff]   ;;  %v2036_v0 = vld [vmem:[%s2300_s23 + $0x80] sm:$0xff]  }
  0x43   : > { %1809 = vmatpush3.bf16.msra.mxu1 %v2016_v44  ;;  %1746 = vmatprep.subr.bf16.mxu0 %v2017_v45  ;;  %v2037_v1 = vld [vmem:[%s2302_s30] ss:$16 sps:$4 sm:$0xff]   ;;  %v2039_v2 = vld [vmem:[%s2302_s30 + $0x4] ss:$16 sps:$4 sm:$0xff]   ;;  %v2040_v3 = vld [vmem:[%s2302_s30 + $0x8] ss:$16 sps:$4 sm:$0xff]  }
  0x44   : > { %1810 = vmatprep.subr.bf16.mxu1 %v2018_v46  ;;  %v2042_v4 = vld [vmem:[%s2302_s30 + $0xc] ss:$16 sps:$4 sm:$0xff]   ;;  %920 = vmatprep.mubr.bf16.mxu0 %v2039_v2  ;;  %v2043_v5 = vld [vmem:[%s2302_s30 + $0x24] ss:$16 sps:$4 sm:$0xff]   ;;  %v2047_v7 = vld [vmem:[%s2302_s30 + $0x20] ss:$16 sps:$4 sm:$0xff]  }
  0x45   : > { %1017 = vmatprep.mubr.bf16.mxu1 %v2042_v4  ;;  %v2045_v6 = vld [vmem:[%s2302_s30 + $0x2c] ss:$16 sps:$4 sm:$0xff]   ;;  %v2048_v8 = vld [vmem:[%s2302_s30 + $0x28] ss:$16 sps:$4 sm:$0xff]   ;;  %v2049_v9 = vld [vmem:[%s2302_s30 + $0x44] ss:$16 sps:$4 sm:$0xff]  }
  0x46   : > { %1747 = vmatpush3.bf16.msra.mxu0 %v2019_v47  ;;  %v2051_v10 = vld [vmem:[%s2302_s30 + $0x4c] ss:$16 sps:$4 sm:$0xff]   ;;  %v2053_v11 = vld [vmem:[%s2302_s30 + $0x40] ss:$16 sps:$4 sm:$0xff]   ;;  %v2054_v12 = vld [vmem:[%s2302_s30 + $0x48] ss:$16 sps:$4 sm:$0xff]  }
  0x47   : > { %1811 = vmatpush3.bf16.msra.mxu1 %v2020_v48  ;;  %1748 = vmatprep.subr.bf16.mxu0 %v2021_v49  ;;  %v2055_v13 = vld [vmem:[%s2302_s30 + $0x64] ss:$16 sps:$4 sm:$0xff]   ;;  %v2057_v14 = vld [vmem:[%s2302_s30 + $0x6c] ss:$16 sps:$4 sm:$0xff]   ;;  %v2059_v15 = vld [vmem:[%s2302_s30 + $0x60] ss:$16 sps:$4 sm:$0xff]  }
  0x48   : > { %1812 = vmatprep.subr.bf16.mxu1 %v2022_v50  ;;  %v2060_v16 = vld [vmem:[%s2302_s30 + $0x68] ss:$16 sps:$4 sm:$0xff]   ;;  %v2061_v17 = vld [vmem:[%s2302_s30 + $0x84] ss:$16 sps:$4 sm:$0xff]   ;;  %v2063_v18 = vld [vmem:[%s2302_s30 + $0x8c] ss:$16 sps:$4 sm:$0xff]  }
  0x49   : > { %v2065_v19 = vld [vmem:[%s2302_s30 + $0x80] ss:$16 sps:$4 sm:$0xff]   ;;  %v2066_v20 = vld [vmem:[%s2302_s30 + $0x88] ss:$16 sps:$4 sm:$0xff]   ;;  %v2067_v21 = vld [vmem:[%s2302_s30 + $0xa4] ss:$16 sps:$4 sm:$0xff]  }
  0x4a   : > { %1749 = vmatpush3.bf16.msra.mxu0 %v2023_v51  ;;  %v2069_v22 = vld [vmem:[%s2302_s30 + $0xac] ss:$16 sps:$4 sm:$0xff]   ;;  %v2071_v23 = vld [vmem:[%s2302_s30 + $0xa0] ss:$16 sps:$4 sm:$0xff]   ;;  %v2072_v24 = vld [vmem:[%s2302_s30 + $0xa8] ss:$16 sps:$4 sm:$0xff]  }
  0x4b   : > { %1813 = vmatpush3.bf16.msra.mxu1 %v2024_v52  ;;  %1750 = vmatprep.subr.bf16.mxu0 %v2025_v53  ;;  %v2073_v25 = vld [vmem:[%s2302_s30 + $0xc4] ss:$16 sps:$4 sm:$0xff]   ;;  %v2075_v26 = vld [vmem:[%s2302_s30 + $0xcc] ss:$16 sps:$4 sm:$0xff]   ;;  %v2077_v27 = vld [vmem:[%s2302_s30 + $0xc0] ss:$16 sps:$4 sm:$0xff]  }
  0x4c   : > { %1814 = vmatprep.subr.bf16.mxu1 %v2026_v54  ;;  %v2078_v28 = vld [vmem:[%s2302_s30 + $0xc8] ss:$16 sps:$4 sm:$0xff]   ;;  %v2079_v29 = vld [vmem:[%s2302_s30 + $0xe4] ss:$16 sps:$4 sm:$0xff]   ;;  %v2081_v30 = vld [vmem:[%s2302_s30 + $0xec] ss:$16 sps:$4 sm:$0xff]  }
  0x4d   : > { %v2083_v31 = vld [vmem:[%s2302_s30 + $0xe0] ss:$16 sps:$4 sm:$0xff]   ;;  %v2084_v32 = vld [vmem:[%s2302_s30 + $0xe8] ss:$16 sps:$4 sm:$0xff]  }
  0x4e   : > { %1751 = vmatpush3.bf16.msra.mxu0 %v2027_v55  ;;  %v425_v49 = vld [vmem:[#allocation2] sm:$0xff] }
  0x4f   : > { %1815 = vmatpush3.bf16.msra.mxu1 %v2028_v56  ;;  %1752 = vmatprep.subr.bf16.mxu0 %v2029_v57 }
  0x50   : > { %1816 = vmatprep.subr.bf16.mxu1 %v2030_v58  ;;  %v426_v58 = vld [vmem:[#allocation2 + $0x58] sm:$0xff] }
  0x52   : > { %1753 = vmatpush3.bf16.msra.mxu0 %v2031_v59 }
  0x53   : > { %1817 = vmatpush3.bf16.msra.mxu1 %v2032_v60  ;;  %1754 = vmatprep.subr.bf16.mxu0 %v2033_v61 }
  0x54   : > { %1818 = vmatprep.subr.bf16.mxu1 %v2034_v62 }
  0x56   : > { %1755 = vmatpush3.bf16.msra.mxu0 %v2035_v63 }
  0x57   : > { %1819 = vmatpush3.bf16.msra.mxu1 %v2036_v0 }
  0x59   : > { %921 = vmatmul.mubr.bf16.vlgmr.msra.gmra.mxu0 %v2037_v1 }
  0x5a   : > { %1018 = vmatmul.mubr.bf16.vlgmr.msra.gmra.mxu1 %v2040_v3  ;;  %928 = vmatprep.mubr.bf16.mxu0 %v2043_v5  ;;  %v427_v3 = vld [vmem:[#allocation2 + $0x18] sm:$0xff] }
  0x5b   : > { %1025 = vmatprep.mubr.bf16.mxu1 %v2045_v6 }
  0x61   : > { %929 = vmatmul.mubr.bf16.gmra.mxu0 %v2047_v7 }
  0x62   : > { %1026 = vmatmul.mubr.bf16.gmra.mxu1 %v2048_v8  ;;  %936 = vmatprep.mubr.bf16.mxu0 %v2049_v9 }
  0x63   : > { %1033 = vmatprep.mubr.bf16.mxu1 %v2051_v10 }
  0x69   : > { %937 = vmatmul.mubr.bf16.gmra.mxu0 %v2053_v11 }
  0x6a   : > { %1034 = vmatmul.mubr.bf16.gmra.mxu1 %v2054_v12  ;;  %944 = vmatprep.mubr.bf16.mxu0 %v2055_v13  ;;  %v428_v12 = vld [vmem:[#allocation2 + $0x50] sm:$0xff] }
  0x6b   : > { %1041 = vmatprep.mubr.bf16.mxu1 %v2057_v14 }
  0x71   : > { %945 = vmatmul.mubr.bf16.gmra.mxu0 %v2059_v15 }
  0x72   : > { %1042 = vmatmul.mubr.bf16.gmra.mxu1 %v2060_v16  ;;  %952 = vmatprep.mubr.bf16.mxu0 %v2061_v17 }
  0x73   : > { %1049 = vmatprep.mubr.bf16.mxu1 %v2063_v18 }
  0x79   : > { %953 = vmatmul.mubr.bf16.gmra.mxu0 %v2065_v19 }
  0x7a   : > { %1050 = vmatmul.mubr.bf16.gmra.mxu1 %v2066_v20  ;;  %960 = vmatprep.mubr.bf16.mxu0 %v2067_v21  ;;  %v429_v21 = vld [vmem:[#allocation2 + $0x68] sm:$0xff] }
  0x7b   : > { %1057 = vmatprep.mubr.bf16.mxu1 %v2069_v22 }
  0x81   : > { %961 = vmatmul.mubr.bf16.gmra.mxu0 %v2071_v23 }
  0x82   : > { %1058 = vmatmul.mubr.bf16.gmra.mxu1 %v2072_v24  ;;  %968 = vmatprep.mubr.bf16.mxu0 %v2073_v25 }
  0x83   : > { %1065 = vmatprep.mubr.bf16.mxu1 %v2075_v26 }
  0x89   : > { %969 = vmatmul.mubr.bf16.gmra.mxu0 %v2077_v27 }
  0x8a   : > { %1066 = vmatmul.mubr.bf16.gmra.mxu1 %v2078_v28  ;;  %976 = vmatprep.mubr.bf16.mxu0 %v2079_v29 }
  0x8b   : > { %1073 = vmatprep.mubr.bf16.mxu1 %v2081_v30  ;;  %v430_v30 = vld [vmem:[#allocation2 + $0x8] sm:$0xff] }
  0x91   : > { %977 = vmatmul.mubr.bf16.gmra.mxu0 %v2083_v31 }
  0x92   : > { %1074 = vmatmul.mubr.bf16.gmra.mxu1 %v2084_v32 }
 0x119   : > { %v1756_v33 = vpop.f32.mrf.mxu0 }
 0x11a   : > { %v1820_v34 = vpop.f32.mrf.mxu1 }
 0x11b   : > { %v1757_v35 = vpop.f32.mrf.mxu0 }
 0x11c   : > { %v1758_v36 = vadd.f32 %v1757_v35, %v1756_v33  ;;  %v1821_v37 = vpop.f32.mrf.mxu1 }
 0x11d   : > { %v1822_v38 = vadd.f32 %v1821_v37, %v1820_v34  ;;  %v1759_v39 = vpop.f32.mrf.mxu0 }
 0x11e   : > { %v1823_v41 = vpop.f32.mrf.mxu1 }
 0x11f   : > { %v1020_v42 = vadd.f32 %v1822_v38, %v1758_v36  ;;  %v1760_v43 = vpop.f32.mrf.mxu0 }
 0x120   : > { %v1761_v44 = vadd.f32 %v1760_v43, %v1759_v39  ;;  %v1824_v45 = vpop.f32.mrf.mxu1  ;;  %v431_v39 = vld [vmem:[#allocation2 + $0x48] sm:$0xff] }
 0x121   : > { %v1082_v46 = vadd.f32 %v1020_v42, %v424_v40  ;;  %v1825_v47 = vadd.f32 %v1824_v45, %v1823_v41  ;;  %v1762_v48 = vpop.f32.mrf.mxu0 }
 0x122   : > { %v1826_v50 = vpop.f32.mrf.mxu1 }
 0x123   : > { %1098 = vst [vmem:[#allocation2 + $0x30] sm:$0xff] %v1082_v46  ;;  %v1023_v51 = vadd.f32 %v1825_v47, %v1761_v44  ;;  %v1763_v52 = vpop.f32.mrf.mxu0 }
 0x124   : > { %v1764_v53 = vadd.f32 %v1763_v52, %v1762_v48  ;;  %v1827_v54 = vpop.f32.mrf.mxu1  ;;  %v432_v48 = vld [vmem:[#allocation2 + $0x40] sm:$0xff] }
 0x125   : > { %v1083_v55 = vadd.f32 %v1023_v51, %v425_v49  ;;  %v1828_v56 = vadd.f32 %v1827_v54, %v1826_v50  ;;  %v1765_v57 = vpop.f32.mrf.mxu0 }
 0x126   : > { %v1829_v59 = vpop.f32.mrf.mxu1 }
 0x127   : > { %1099 = vst [vmem:[#allocation2] sm:$0xff] %v1083_v55  ;;  %v1028_v60 = vadd.f32 %v1828_v56, %v1764_v53  ;;  %v1766_v61 = vpop.f32.mrf.mxu0 }
 0x128   : > { %v1767_v62 = vadd.f32 %v1766_v61, %v1765_v57  ;;  %v1830_v63 = vpop.f32.mrf.mxu1  ;;  %v433_v57 = vld [vmem:[#allocation2 + $0x20] sm:$0xff] }
 0x129   : > { %v1084_v0 = vadd.f32 %v1028_v60, %v426_v58  ;;  %v1831_v1 = vadd.f32 %v1830_v63, %v1829_v59  ;;  %v1768_v2 = vpop.f32.mrf.mxu0 }
 0x12a   : > { %v1832_v4 = vpop.f32.mrf.mxu1 }
 0x12b   : > { %1100 = vst [vmem:[#allocation2 + $0x58] sm:$0xff] %v1084_v0  ;;  %v1031_v5 = vadd.f32 %v1831_v1, %v1767_v62  ;;  %v1769_v6 = vpop.f32.mrf.mxu0 }
 0x12c   : > { %v1770_v7 = vadd.f32 %v1769_v6, %v1768_v2  ;;  %v1833_v8 = vpop.f32.mrf.mxu1  ;;  %v434_v2 = vld [vmem:[#allocation2 + $0x10] sm:$0xff] }
 0x12d   : > { %v1085_v9 = vadd.f32 %v1031_v5, %v427_v3  ;;  %v1834_v10 = vadd.f32 %v1833_v8, %v1832_v4  ;;  %v1771_v11 = vpop.f32.mrf.mxu0 }
 0x12e   : > { %v1835_v13 = vpop.f32.mrf.mxu1 }
 0x12f   : > { %1101 = vst [vmem:[#allocation2 + $0x18] sm:$0xff] %v1085_v9  ;;  %v1036_v14 = vadd.f32 %v1834_v10, %v1770_v7  ;;  %v1772_v15 = vpop.f32.mrf.mxu0 }
 0x130   : > { %v1773_v16 = vadd.f32 %v1772_v15, %v1771_v11  ;;  %v1836_v17 = vpop.f32.mrf.mxu1  ;;  %v435_v11 = vld [vmem:[#allocation2 + $0x38] sm:$0xff] }
 0x131   : > { %v1086_v18 = vadd.f32 %v1036_v14, %v428_v12  ;;  %v1837_v19 = vadd.f32 %v1836_v17, %v1835_v13  ;;  %v1774_v20 = vpop.f32.mrf.mxu0 }
 0x132   : > { %v1838_v22 = vpop.f32.mrf.mxu1 }
 0x133   : > { %1102 = vst [vmem:[#allocation2 + $0x50] sm:$0xff] %v1086_v18  ;;  %v1039_v23 = vadd.f32 %v1837_v19, %v1773_v16  ;;  %v1775_v24 = vpop.f32.mrf.mxu0 }
 0x134   : > { %v1776_v25 = vadd.f32 %v1775_v24, %v1774_v20  ;;  %v1839_v26 = vpop.f32.mrf.mxu1  ;;  %v436_v20 = vld [vmem:[#allocation2 + $0x60] sm:$0xff] }
 0x135   : > { %v1087_v27 = vadd.f32 %v1039_v23, %v429_v21  ;;  %v1840_v28 = vadd.f32 %v1839_v26, %v1838_v22  ;;  %v1777_v29 = vpop.f32.mrf.mxu0 }
 0x136   : > { %v1841_v31 = vpop.f32.mrf.mxu1 }
 0x137   : > { %1103 = vst [vmem:[#allocation2 + $0x68] sm:$0xff] %v1087_v27  ;;  %v1044_v32 = vadd.f32 %v1840_v28, %v1776_v25  ;;  %v1778_v33 = vpop.f32.mrf.mxu0 }
 0x138   : > { %v1779_v34 = vadd.f32 %v1778_v33, %v1777_v29  ;;  %v1842_v35 = vpop.f32.mrf.mxu1  ;;  %v437_v29 = vld [vmem:[#allocation2 + $0x70] sm:$0xff] }
 0x139   : > { %v1088_v36 = vadd.f32 %v1044_v32, %v430_v30  ;;  %v1843_v37 = vadd.f32 %v1842_v35, %v1841_v31  ;;  %v1780_v38 = vpop.f32.mrf.mxu0 }
 0x13a   : > { %v1844_v40 = vpop.f32.mrf.mxu1 }
 0x13b   : > { %1104 = vst [vmem:[#allocation2 + $0x8] sm:$0xff] %v1088_v36  ;;  %v1047_v41 = vadd.f32 %v1843_v37, %v1779_v34  ;;  %v1781_v42 = vpop.f32.mrf.mxu0 }
 0x13c   : > { %v1782_v43 = vadd.f32 %v1781_v42, %v1780_v38  ;;  %v1845_v44 = vpop.f32.mrf.mxu1  ;;  %v438_v38 = vld [vmem:[#allocation2 + $0x78] sm:$0xff] }
 0x13d   : > { %v1089_v45 = vadd.f32 %v1047_v41, %v431_v39  ;;  %v1846_v46 = vadd.f32 %v1845_v44, %v1844_v40  ;;  %v1783_v47 = vpop.f32.mrf.mxu0 }
 0x13e   : > { %v1847_v49 = vpop.f32.mrf.mxu1 }
 0x13f   : > { %1105 = vst [vmem:[#allocation2 + $0x48] sm:$0xff] %v1089_v45  ;;  %v1052_v50 = vadd.f32 %v1846_v46, %v1782_v43  ;;  %v1784_v51 = vpop.f32.mrf.mxu0  ;;  %v439_v46 = vld [vmem:[#allocation2 + $0x28] sm:$0xff] }
 0x140   : > { %v1785_v52 = vadd.f32 %v1784_v51, %v1783_v47  ;;  %v1848_v53 = vpop.f32.mrf.mxu1 }
 0x141   : > { %v1090_v54 = vadd.f32 %v1052_v50, %v432_v48  ;;  %v1849_v55 = vadd.f32 %v1848_v53, %v1847_v49  ;;  %v1786_v56 = vpop.f32.mrf.mxu0 }
 0x142   : > { %v1850_v58 = vpop.f32.mrf.mxu1 }
 0x143   : > { %1106 = vst [vmem:[#allocation2 + $0x40] sm:$0xff] %v1090_v54  ;;  %v1055_v59 = vadd.f32 %v1849_v55, %v1785_v52  ;;  %v1787_v60 = vpop.f32.mrf.mxu0 }
 0x144   : > { %v1788_v61 = vadd.f32 %v1787_v60, %v1786_v56  ;;  %v1851_v62 = vpop.f32.mrf.mxu1 }
 0x145   : > { %v1091_v63 = vadd.f32 %v1055_v59, %v433_v57  ;;  %v1852_v0 = vadd.f32 %v1851_v62, %v1850_v58  ;;  %v1789_v1 = vpop.f32.mrf.mxu0 }
 0x146   : > { %v1853_v3 = vpop.f32.mrf.mxu1 }
 0x147   : > { %1107 = vst [vmem:[#allocation2 + $0x20] sm:$0xff] %v1091_v63  ;;  %v1060_v4 = vadd.f32 %v1852_v0, %v1788_v61  ;;  %v1790_v5 = vpop.f32.mrf.mxu0 }
 0x148   : > { %v1791_v6 = vadd.f32 %v1790_v5, %v1789_v1  ;;  %v1854_v7 = vpop.f32.mrf.mxu1 }
 0x149   : > { %v1092_v8 = vadd.f32 %v1060_v4, %v434_v2  ;;  %v1855_v9 = vadd.f32 %v1854_v7, %v1853_v3  ;;  %v1792_v10 = vpop.f32.mrf.mxu0 }
 0x14a   : > { %v1856_v12 = vpop.f32.mrf.mxu1 }
 0x14b   : > { %1108 = vst [vmem:[#allocation2 + $0x10] sm:$0xff] %v1092_v8  ;;  %v1063_v13 = vadd.f32 %v1855_v9, %v1791_v6  ;;  %v1793_v14 = vpop.f32.mrf.mxu0 }
 0x14c   : > { %v1794_v15 = vadd.f32 %v1793_v14, %v1792_v10  ;;  %v1857_v16 = vpop.f32.mrf.mxu1 }
 0x14d   : > { %v1093_v17 = vadd.f32 %v1063_v13, %v435_v11  ;;  %v1858_v18 = vadd.f32 %v1857_v16, %v1856_v12  ;;  %v1795_v19 = vpop.f32.mrf.mxu0 }
 0x14e   : > { %v1859_v21 = vpop.f32.mrf.mxu1 }
 0x14f   : > { %1109 = vst [vmem:[#allocation2 + $0x38] sm:$0xff] %v1093_v17  ;;  %v1068_v22 = vadd.f32 %v1858_v18, %v1794_v15  ;;  %v1796_v23 = vpop.f32.mrf.mxu0 }
 0x150   : > { %v1797_v24 = vadd.f32 %v1796_v23, %v1795_v19  ;;  %v1860_v25 = vpop.f32.mrf.mxu1 }
 0x151   : > { %v1094_v26 = vadd.f32 %v1068_v22, %v436_v20  ;;  %v1861_v27 = vadd.f32 %v1860_v25, %v1859_v21  ;;  %v1798_v28 = vpop.f32.mrf.mxu0 }
 0x152   : > { %v1862_v30 = vpop.f32.mrf.mxu1 }
 0x153   : > { %1110 = vst [vmem:[#allocation2 + $0x60] sm:$0xff] %v1094_v26  ;;  %v1071_v31 = vadd.f32 %v1861_v27, %v1797_v24  ;;  %v1799_v32 = vpop.f32.mrf.mxu0 }
 0x154   : > { %v1800_v33 = vadd.f32 %v1799_v32, %v1798_v28  ;;  %v1863_v34 = vpop.f32.mrf.mxu1 }
 0x155   : > { %v1095_v35 = vadd.f32 %v1071_v31, %v437_v29  ;;  %v1864_v36 = vadd.f32 %v1863_v34, %v1862_v30  ;;  %v1801_v37 = vpop.f32.mrf.mxu0 }
 0x156   : > { %v1865_v39 = vpop.f32.mrf.mxu1 }
 0x157   : > { %1111 = vst [vmem:[#allocation2 + $0x70] sm:$0xff] %v1095_v35  ;;  %v1076_v40 = vadd.f32 %v1864_v36, %v1800_v33  ;;  %v1802_v41 = vpop.f32.mrf.mxu0 }
 0x158   : > { %v1803_v42 = vadd.f32 %v1802_v41, %v1801_v37  ;;  %v1866_v43 = vpop.f32.mrf.mxu1 }
 0x159   : > { %v1096_v44 = vadd.f32 %v1076_v40, %v438_v38  ;;  %v1867_v45 = vadd.f32 %v1866_v43, %v1865_v39 }
 0x15b   : > { %1112 = vst [vmem:[#allocation2 + $0x78] sm:$0xff] %v1096_v44  ;;  %v1079_v47 = vadd.f32 %v1867_v45, %v1803_v42  ;;  %1117 = sbr.rel (%p1715_p11) target bundleno = 817 (0x331), region = 79 }
 0x15d   : > { %v1097_v48 = vadd.f32 %v1079_v47, %v439_v46 }
 0x15f   : > { %1113 = vst [vmem:[#allocation2 + $0x28] sm:$0xff] %v1097_v48 }
 0x160   : > { %v2085_v49 = vld [vmem:[%s2511_s3 + $0x38] sm:$0xff]   ;;  %v2086_v50 = vld [vmem:[%s2511_s3 + $0x30] sm:$0xff]   ;;  %v2087_v51 = vld [vmem:[%s2511_s3 + $0x28] sm:$0xff]  }
 0x161   : > { %1900 = vmatprep.subr.bf16.mxu0 %v2085_v49  ;;  %v2088_v52 = vld [vmem:[%s2511_s3 + $0x20] sm:$0xff]   ;;  %v1118_v53 = vld [vmem:[#allocation2 + $0x30] sm:$0xff]  ;;  %v2089_v60 = vld [vmem:[%s2511_s3 + $0x18] sm:$0xff]  }
 0x162   : > { %1901 = vmatpush3.bf16.msra.mxu0 %v2085_v49  ;;  %v1119_v54 = vld [vmem:[#allocation2] sm:$0xff]  ;;  %v2093_v62 = vld [vmem:[%s2513_s5 + $0x38] sm:$0xff]   ;;  %v2094_v63 = vld [vmem:[%s2513_s5 + $0x30] sm:$0xff]  }
 0x163   : > { %1902 = vmatprep.subr.bf16.mxu0 %v2086_v50  ;;  %v2385_v55 = vld [vmem:[%s2510_s2] ss:$0 sm:$0xff]  ;;  %v2090_v0 = vld [vmem:[%s2511_s3 + $0x10] sm:$0xff]   ;;  %1932 = vmatprep.subr.bf16.mxu1 %v2093_v62  ;;  %v1120_v1 = vld [vmem:[#allocation2 + $0x58] sm:$0xff] }
 0x164   : > { %v1141_v56 = vadd.f32 %v2385_v55, %v1118_v53  ;;  %v1142_v57 = vadd.f32 %v2385_v55, %v1119_v54  ;;  %v1121_v2 = vld [vmem:[#allocation2 + $0x18] sm:$0xff]  ;;  %1933 = vmatpush3.bf16.msra.mxu1 %v2093_v62  ;;  %v2091_v3 = vld [vmem:[%s2511_s3 + $0x8] sm:$0xff]   ;;  %v1122_v4 = vld [vmem:[#allocation2 + $0x50] sm:$0xff]  ;;  %v1143_v7 = vadd.f32 %v2385_v55, %v1120_v1 }
 0x165   : > { %1934 = vmatprep.subr.bf16.mxu1 %v2094_v63  ;;  %v2095_v5 = vld [vmem:[%s2513_s5 + $0x28] sm:$0xff]   ;;  %v1144_v8 = vadd.f32 %v2385_v55, %v1121_v2  ;;  %v2096_v9 = vld [vmem:[%s2513_s5 + $0x20] sm:$0xff]   ;;  %v1145_v10 = vadd.f32 %v2385_v55, %v1122_v4  ;;  %v2097_v15 = vld [vmem:[%s2513_s5 + $0x18] sm:$0xff]  }
 0x166   : > { %1903 = vmatpush3.bf16.msra.mxu0 %v2086_v50  ;;  %v1157_v58 = vmax.f32 %v1141_v56, 0.0  ;;  %v1158_v59 = vmax.f32 %v1142_v57, 0.0  ;;  %v1123_v6 = vld [vmem:[#allocation2 + $0x68] sm:$0xff]  ;;  %v2092_v12 = vld [vmem:[%s2511_s3] sm:$0xff]   ;;  %v1159_v13 = vmax.f32 %v1143_v7, 0.0  ;;  %v1128_v32 = vld [vmem:[#allocation2 + $0x10] sm:$0xff] }
 0x167   : > { %1904 = vmatprep.subr.bf16.mxu0 %v2087_v51  ;;  %v1146_v11 = vadd.f32 %v2385_v55, %v1123_v6  ;;  %v1160_v14 = vmax.f32 %v1144_v8, 0.0  ;;  %v1161_v16 = vmax.f32 %v1145_v10, 0.0  ;;  %v1124_v18 = vld [vmem:[#allocation2 + $0x8] sm:$0xff]  ;;  %v1126_v20 = vld [vmem:[#allocation2 + $0x40] sm:$0xff]  ;;  %v1129_v33 = vld [vmem:[#allocation2 + $0x38] sm:$0xff]  ;;  %v1151_v37 = vadd.f32 %v2385_v55, %v1128_v32 }
 0x168   : > { %v1173_v61 = vpack.c.bf16 %v1158_v59, %v1157_v58  ;;  %1935 = vmatpush3.bf16.msra.mxu1 %v2094_v63  ;;  %v1125_v19 = vld [vmem:[#allocation2 + $0x48] sm:$0xff]  ;;  %v1127_v21 = vld [vmem:[#allocation2 + $0x20] sm:$0xff]  ;;  %v1147_v23 = vadd.f32 %v2385_v55, %v1124_v18  ;;  %v1149_v26 = vadd.f32 %v2385_v55, %v1126_v20  ;;  %v1131_v35 = vld [vmem:[#allocation2 + $0x70] sm:$0xff]  ;;  %v1152_v38 = vadd.f32 %v2385_v55, %v1129_v33 }
 0x169   : > { %1936 = vmatprep.subr.bf16.mxu1 %v2095_v5  ;;  %v1162_v17 = vmax.f32 %v1146_v11, 0.0  ;;  %v1174_v22 = vpack.c.bf16 %v1160_v14, %v1159_v13  ;;  %v1148_v24 = vadd.f32 %v2385_v55, %v1125_v19  ;;  %v1150_v27 = vadd.f32 %v2385_v55, %v1127_v21  ;;  %v1130_v34 = vld [vmem:[#allocation2 + $0x60] sm:$0xff]  ;;  %v1132_v46 = vld [vmem:[#allocation2 + $0x78] sm:$0xff]  ;;  %v1133_v47 = vld [vmem:[#allocation2 + $0x28] sm:$0xff] }
 0x16a   : > { %1905 = vmatpush3.bf16.msra.mxu0 %v2087_v51  ;;  %1916 = vmatprep.mubr.bf16.mxu0 %v1173_v61  ;;  %v1163_v28 = vmax.f32 %v1147_v23, 0.0  ;;  %v1165_v30 = vmax.f32 %v1149_v26, 0.0  ;;  %v1153_v40 = vadd.f32 %v2385_v55, %v1130_v34  ;;  %v1154_v41 = vadd.f32 %v2385_v55, %v1131_v35  ;;  %v2098_v56 = vld [vmem:[%s2513_s5 + $0x10] sm:$0xff]   ;;  %v2099_v57 = vld [vmem:[%s2513_s5 + $0x8] sm:$0xff]  }
 0x16b   : > { %1906 = vmatprep.subr.bf16.mxu0 %v2088_v52  ;;  %v1175_v25 = vpack.c.bf16 %v1162_v17, %v1161_v16  ;;  %v1164_v29 = vmax.f32 %v1148_v24, 0.0  ;;  %v1166_v31 = vmax.f32 %v1150_v27, 0.0  ;;  %v1167_v42 = vmax.f32 %v1151_v37, 0.0 }
 0x16c   : > { %1937 = vmatpush3.bf16.msra.mxu1 %v2095_v5  ;;  %v1168_v43 = vmax.f32 %v1152_v38, 0.0  ;;  %v1169_v44 = vmax.f32 %v1153_v40, 0.0  ;;  %v1170_v45 = vmax.f32 %v1154_v41, 0.0  ;;  %v1155_v49 = vadd.f32 %v2385_v55, %v1132_v46 }
 0x16d   : > { %1938 = vmatprep.subr.bf16.mxu1 %v2096_v9  ;;  %v1176_v36 = vpack.c.bf16 %v1164_v29, %v1163_v28  ;;  %v1177_v39 = vpack.c.bf16 %v1166_v31, %v1165_v30  ;;  %v1156_v50 = vadd.f32 %v2385_v55, %v1133_v47  ;;  %v2100_v55 = vld [vmem:[%s2513_s5] sm:$0xff]  }
 0x16e   : > { %1907 = vmatpush3.bf16.msra.mxu0 %v2088_v52  ;;  %v1178_v48 = vpack.c.bf16 %v1168_v43, %v1167_v42  ;;  %v1179_v51 = vpack.c.bf16 %v1170_v45, %v1169_v44  ;;  %v1171_v52 = vmax.f32 %v1155_v49, 0.0 }
 0x16f   : > { %1908 = vmatprep.subr.bf16.mxu0 %v2089_v60  ;;  %v1172_v53 = vmax.f32 %v1156_v50, 0.0 }
 0x170   : > { %1939 = vmatpush3.bf16.msra.mxu1 %v2096_v9 }
 0x171   : > { %1940 = vmatprep.subr.bf16.mxu1 %v2097_v15  ;;  %v1180_v54 = vpack.c.bf16 %v1172_v53, %v1171_v52 }
 0x172   : > { %1909 = vmatpush3.bf16.msra.mxu0 %v2089_v60  ;;  %v1717_v60 = vld [vmem:[%s2512_s4] ss:$0 sm:$0xff] }
 0x173   : > { %1910 = vmatprep.subr.bf16.mxu0 %v2090_v0 }
 0x174   : > { %1941 = vmatpush3.bf16.msra.mxu1 %v2097_v15 }
 0x175   : > { %1942 = vmatprep.subr.bf16.mxu1 %v2098_v56 }
 0x176   : > { %1911 = vmatpush3.bf16.msra.mxu0 %v2090_v0 }
 0x177   : > { %1912 = vmatprep.subr.bf16.mxu0 %v2091_v3 }
 0x178   : > { %1943 = vmatpush3.bf16.msra.mxu1 %v2098_v56 }
 0x179   : > { %1944 = vmatprep.subr.bf16.mxu1 %v2099_v57 }
 0x17a   : > { %1913 = vmatpush3.bf16.msra.mxu0 %v2091_v3 }
 0x17b   : > { %1914 = vmatprep.subr.bf16.mxu0 %v2092_v12 }
 0x17c   : > { %1945 = vmatpush3.bf16.msra.mxu1 %v2099_v57 }
 0x17d   : > { %1946 = vmatprep.subr.bf16.mxu1 %v2100_v55 }
 0x17e   : > { %1915 = vmatpush3.bf16.msra.mxu0 %v2092_v12 }
 0x180   : > { %1947 = vmatpush3.bf16.msra.mxu1 %v2100_v55 }
 0x181   : > { %1917 = vmatmul.mubr.bf16.vlgmr.msra.gmra.mxu0 %v1174_v22 }
 0x182   : > { %1920 = vmatprep.mubr.bf16.mxu0 %v1175_v25 }
 0x189   : > { %1921 = vmatmul.mubr.bf16.gmra.mxu0 %v1176_v36 }
 0x18a   : > { %1924 = vmatprep.mubr.bf16.mxu0 %v1177_v39 }
 0x191   : > { %1925 = vmatmul.mubr.bf16.gmra.mxu0 %v1178_v48 }
 0x192   : > { %1928 = vmatprep.mubr.bf16.mxu0 %v1179_v51  ;;  %v1726_v51 = vld [vmem:[%s2514_s6] ss:$0 sm:$0xff] }
 0x199   : > { %1929 = vmatmul.mubr.bf16.gmra.mxu0 %v1180_v54 }
 0x241   : > { %v1918_v58 = vpop.f32.mrf.mxu0 }
 0x242   : > { %v1295_v0 = vadd.f32 %v1918_v58, %v1717_v60 }
 0x243   : > { %v1286_v59 = vpop.f32.mrf.mxu0 }
 0x244   : > { %v1287_v62 = vadd.f32 %v1717_v60, %v1286_v59  ;;  %v1351_v7 = vmax.f32 %v1295_v0, 0.0 }
 0x245   : > { %v1919_v61 = vpop.f32.mrf.mxu0 }
 0x246   : > { %v1298_v63 = vadd.f32 %v1919_v61, %v1717_v60  ;;  %v1349_v5 = vmax.f32 %v1287_v62, 0.0 }
 0x247   : > { %v1289_v1 = vpop.f32.mrf.mxu0 }
 0x248   : > { %v1290_v2 = vadd.f32 %v1717_v60, %v1289_v1  ;;  %v1352_v3 = vmax.f32 %v1298_v63, 0.0 }
 0x249   : > { %v1922_v4 = vpop.f32.mrf.mxu0 }
 0x24a   : > { %v1350_v6 = vmax.f32 %v1290_v2, 0.0  ;;  %v1366_v10 = vpack.c.bf16 %v1352_v3, %v1351_v7  ;;  %v1311_v14 = vadd.f32 %v1922_v4, %v1717_v60 }
 0x24b   : > { %v1302_v8 = vpop.f32.mrf.mxu0 }
 0x24c   : > { %v1365_v9 = vpack.c.bf16 %v1350_v6, %v1349_v5  ;;  %v1303_v12 = vadd.f32 %v1717_v60, %v1302_v8  ;;  %v1355_v21 = vmax.f32 %v1311_v14, 0.0 }
 0x24d   : > { %v1923_v11 = vpop.f32.mrf.mxu0 }
 0x24e   : > { %v1314_v13 = vadd.f32 %v1923_v11, %v1717_v60  ;;  %1948 = vmatprep.mubr.bf16.mxu1 %v1365_v9  ;;  %v1353_v19 = vmax.f32 %v1303_v12, 0.0 }
 0x24f   : > { %v1305_v15 = vpop.f32.mrf.mxu0  ;;  %1949 = vmatmul.mubr.bf16.vlgmr.msra.gmra.mxu1 %v1366_v10 }
 0x250   : > { %v1306_v16 = vadd.f32 %v1717_v60, %v1305_v15  ;;  %v1356_v17 = vmax.f32 %v1314_v13, 0.0 }
 0x251   : > { %v1926_v18 = vpop.f32.mrf.mxu0 }
 0x252   : > { %v1354_v20 = vmax.f32 %v1306_v16, 0.0  ;;  %v1368_v24 = vpack.c.bf16 %v1356_v17, %v1355_v21  ;;  %v1327_v28 = vadd.f32 %v1926_v18, %v1717_v60 }
 0x253   : > { %v1318_v22 = vpop.f32.mrf.mxu0 }
 0x254   : > { %v1367_v23 = vpack.c.bf16 %v1354_v20, %v1353_v19  ;;  %v1319_v26 = vadd.f32 %v1717_v60, %v1318_v22  ;;  %v1359_v35 = vmax.f32 %v1327_v28, 0.0 }
 0x255   : > { %v1927_v25 = vpop.f32.mrf.mxu0 }
 0x256   : > { %v1330_v27 = vadd.f32 %v1927_v25, %v1717_v60  ;;  %1952 = vmatprep.mubr.bf16.mxu1 %v1367_v23  ;;  %v1357_v33 = vmax.f32 %v1319_v26, 0.0 }
 0x257   : > { %v1321_v29 = vpop.f32.mrf.mxu0  ;;  %1953 = vmatmul.mubr.bf16.gmra.mxu1 %v1368_v24 }
 0x258   : > { %v1322_v30 = vadd.f32 %v1717_v60, %v1321_v29  ;;  %v1360_v31 = vmax.f32 %v1330_v27, 0.0 }
 0x259   : > { %v1930_v32 = vpop.f32.mrf.mxu0 }
 0x25a   : > { %v1358_v34 = vmax.f32 %v1322_v30, 0.0  ;;  %v1370_v38 = vpack.c.bf16 %v1360_v31, %v1359_v35  ;;  %v1343_v42 = vadd.f32 %v1930_v32, %v1717_v60 }
 0x25b   : > { %v1334_v36 = vpop.f32.mrf.mxu0 }
 0x25c   : > { %v1369_v37 = vpack.c.bf16 %v1358_v34, %v1357_v33  ;;  %v1335_v40 = vadd.f32 %v1717_v60, %v1334_v36  ;;  %v1363_v48 = vmax.f32 %v1343_v42, 0.0 }
 0x25d   : > { %v1931_v39 = vpop.f32.mrf.mxu0 }
 0x25e   : > { %v1346_v41 = vadd.f32 %v1931_v39, %v1717_v60  ;;  %1956 = vmatprep.mubr.bf16.mxu1 %v1369_v37  ;;  %v1361_v46 = vmax.f32 %v1335_v40, 0.0 }
 0x25f   : > { %v1337_v43 = vpop.f32.mrf.mxu0  ;;  %1957 = vmatmul.mubr.bf16.gmra.mxu1 %v1370_v38 }
 0x260   : > { %v1338_v44 = vadd.f32 %v1717_v60, %v1337_v43  ;;  %v1364_v45 = vmax.f32 %v1346_v41, 0.0 }
 0x262   : > { %v1362_v47 = vmax.f32 %v1338_v44, 0.0  ;;  %v1372_v50 = vpack.c.bf16 %v1364_v45, %v1363_v48 }
 0x264   : > { %v1371_v49 = vpack.c.bf16 %v1362_v47, %v1361_v46 }
 0x266   : > { %1960 = vmatprep.mubr.bf16.mxu1 %v1371_v49 }
 0x267   : > { %1961 = vmatmul.mubr.bf16.gmra.mxu1 %v1372_v50 }
 0x30f   : > { %v1950_v52 = vpop.f32.mrf.mxu1 }
 0x310   : > { %v1487_v53 = vadd.f32 %v1950_v52, %v1726_v51 }
 0x311   : > { %v1478_v54 = vpop.f32.mrf.mxu1 }
 0x312   : > { %1543 = vst [vmem:[%s2515_s7 + $0x10] sm:$0xff] %v1487_v53  ;;  %v1479_v56 = vadd.f32 %v1726_v51, %v1478_v54 }
 0x313   : > { %v1951_v57 = vpop.f32.mrf.mxu1 }
 0x314   : > { %1541 = vst [vmem:[%s2515_s7] sm:$0xff] %v1479_v56  ;;  %v1490_v55 = vadd.f32 %v1951_v57, %v1726_v51 }
 0x315   : > { %v1481_v58 = vpop.f32.mrf.mxu1 }
 0x316   : > { %1544 = vst [vmem:[%s2515_s7 + $0x18] sm:$0xff] %v1490_v55  ;;  %v1482_v59 = vadd.f32 %v1726_v51, %v1481_v58 }
 0x317   : > { %v1954_v60 = vpop.f32.mrf.mxu1 }
 0x318   : > { %1542 = vst [vmem:[%s2515_s7 + $0x8] sm:$0xff] %v1482_v59  ;;  %v1503_v61 = vadd.f32 %v1954_v60, %v1726_v51 }
 0x319   : > { %v1494_v62 = vpop.f32.mrf.mxu1 }
 0x31a   : > { %1547 = vst [vmem:[%s2515_s7 + $0x30] sm:$0xff] %v1503_v61  ;;  %v1495_v63 = vadd.f32 %v1726_v51, %v1494_v62 }
 0x31b   : > { %v1955_v0 = vpop.f32.mrf.mxu1 }
 0x31c   : > { %1545 = vst [vmem:[%s2515_s7 + $0x20] sm:$0xff] %v1495_v63  ;;  %v1506_v1 = vadd.f32 %v1955_v0, %v1726_v51 }
 0x31d   : > { %v1497_v2 = vpop.f32.mrf.mxu1 }
 0x31e   : > { %1548 = vst [vmem:[%s2515_s7 + $0x38] sm:$0xff] %v1506_v1  ;;  %v1498_v3 = vadd.f32 %v1726_v51, %v1497_v2 }
 0x31f   : > { %v1958_v4 = vpop.f32.mrf.mxu1 }
 0x320   : > { %1546 = vst [vmem:[%s2515_s7 + $0x28] sm:$0xff] %v1498_v3  ;;  %v1519_v5 = vadd.f32 %v1958_v4, %v1726_v51 }
 0x321   : > { %v1510_v6 = vpop.f32.mrf.mxu1 }
 0x322   : > { %1551 = vst [vmem:[%s2515_s7 + $0x50] sm:$0xff] %v1519_v5  ;;  %v1511_v7 = vadd.f32 %v1726_v51, %v1510_v6 }
 0x323   : > { %v1959_v8 = vpop.f32.mrf.mxu1 }
 0x324   : > { %1549 = vst [vmem:[%s2515_s7 + $0x40] sm:$0xff] %v1511_v7  ;;  %v1522_v9 = vadd.f32 %v1959_v8, %v1726_v51 }
 0x325   : > { %v1513_v10 = vpop.f32.mrf.mxu1 }
 0x326   : > { %1552 = vst [vmem:[%s2515_s7 + $0x58] sm:$0xff] %v1522_v9  ;;  %v1514_v11 = vadd.f32 %v1726_v51, %v1513_v10 }
 0x327   : > { %v1962_v12 = vpop.f32.mrf.mxu1 }
 0x328   : > { %1550 = vst [vmem:[%s2515_s7 + $0x48] sm:$0xff] %v1514_v11  ;;  %v1535_v13 = vadd.f32 %v1962_v12, %v1726_v51 }
 0x329   : > { %v1526_v14 = vpop.f32.mrf.mxu1 }
 0x32a   : > { %1555 = vst [vmem:[%s2515_s7 + $0x70] sm:$0xff] %v1535_v13  ;;  %v1527_v15 = vadd.f32 %v1726_v51, %v1526_v14 }
 0x32b   : > { %v1963_v16 = vpop.f32.mrf.mxu1 }
 0x32c   : > { %1553 = vst [vmem:[%s2515_s7 + $0x60] sm:$0xff] %v1527_v15  ;;  %v1538_v17 = vadd.f32 %v1963_v16, %v1726_v51 }
 0x32d   : > { %v1529_v18 = vpop.f32.mrf.mxu1 }
 0x32e   : > { %1556 = vst [vmem:[%s2515_s7 + $0x78] sm:$0xff] %v1538_v17  ;;  %v1530_v19 = vadd.f32 %v1726_v51, %v1529_v18 }
 0x330   : > { %1554 = vst [vmem:[%s2515_s7 + $0x68] sm:$0xff] %v1530_v19 }
 0x331 PF: > { %s17_s28 = sadd.s32 1, %s2139_s28   ;;  %s2516_s24 = smov %s2127_s25 }
 0x332   : > { %p14_p12 = scmp.ge.s32.totalorder %s17_s28, 15   ;;  %s2517_s25 = smov %s2217_s9 }
 0x333   : > { %s2518_s26 = smov %s2135_s27  ;;  %s2519_s27 = smov %s2521_s29 }
 0x334   :  { %16 = sbr.rel (!%p14_p12) target bundleno = 3 (0x3), region = 117 }

</bundles_post_ra>
